<compile_context>
chip_gen: v7x
topology: tpu7x:2x2x1
jax: 0.10.0
libtpu: 0.0.40
codegen_flags: <defaults>
</compile_context>

<pallas_src>
import math
from functools import partial

import jax
import jax.numpy as jnp
from jax.experimental import pallas as pl
from jax.experimental.pallas import tpu as pltpu

N_DIMS = 15                  # raw x feature dim (torch: n_dims)
N_FEAT = N_DIMS + 1          # 16: xs ++ ys[..., None]  (TransformerModel._combine)
N_EMBD = 32                  # GPT-2 hidden size
N_LAYER = 2
N_HEAD = 2                   # irrelevant at seq_len == 1 (attention == V)
N_INNER = 4 * N_EMBD         # 128
LN_EPS = 1e-5

# Packed-slab row offsets.
_W32_STRIDE = N_EMBD + N_INNER                  # per-layer rows in the K=32 slab
_W32_RO_OFF = N_LAYER * _W32_STRIDE             # read-out row (320)
_B_STRIDE = 2 * N_EMBD + N_INNER                # per-layer rows in the bias slab
_B_RO_OFF = N_EMBD + N_LAYER * _B_STRIDE        # read-out scalar bias row (416)

# Batch-tile cap, derived from VMEM need (not a fixed small number): live
# f32/bf16 temporaries are ~2.5 KiB per batch column, so 4096 columns is
# ~10 MiB -- far below v5e/v6e (128 MiB) and v7x (64 MiB physical / 32 MiB
# scoped default) budgets.
_MAX_TB = 4096
_VMEM_LIMIT = 32 * 1024 * 1024                  # safe on every generation

_SQRT_2_OVER_PI = math.sqrt(2.0 / math.pi)


def _round_up(n, m):
  return ((n + m - 1) // m) * m


def _tpu_generation():
  """Best-effort chip generation (5, 6, 7, ...); 0 if unknown."""
  try:
    kind = jax.devices()[0].device_kind.lower()
  except Exception:  # pragma: no cover - defensive
    return 0
  for g in (7, 6, 5, 4, 3, 2):
    if f"v{g}" in kind:
      return g
  return 0


def _gelu_new(x):
  # HF GPT-2 "gelu_new": 0.5*x*(1 + tanh(sqrt(2/pi)*(x + 0.044715*x^3)))
  return 0.5 * x * (1.0 + jnp.tanh(
      _SQRT_2_OVER_PI * (x + 0.044715 * x * x * x)))


def _normalize_feat(x):
  """LayerNorm (no affine) over the feature axis (axis 0; batch on lanes)."""
  mean = jnp.mean(x, axis=0, keepdims=True)
  xc = x - mean
  var = jnp.mean(xc * xc, axis=0, keepdims=True)
  return xc * jax.lax.rsqrt(var + LN_EPS)


# --------------------------------------------------------------------------
# Kernel
# --------------------------------------------------------------------------
def transformer_kernel(x_ref, wemb_ref, w32_ref, w128_ref, b_ref, out_ref,
                       *, elemwise_bf16):
  """One batch tile, batch-on-lanes layout.

  x_ref    : (N_FEAT, tb) bf16     batch tile of combined [xs | ys] features
  wemb_ref : (N_EMBD, N_FEAT) bf16 embed weight, transposed
  w32_ref  : (336, N_EMBD) bf16    per layer [ln1*V*c_proj ^T (32,32),
                                   ln2*c_fc ^T (128,32)], then read-out (1,32)
  w128_ref : (N_LAYER*N_EMBD, N_INNER) bf16   mlp c_proj ^T per layer
  b_ref    : (424, 1) f32          bias columns, concatenated along sublanes
  out_ref  : (1, tb) f32           lane-dense prediction row
  """
  bf16 = jnp.bfloat16
  f32 = jnp.float32
  cdt = bf16 if elemwise_bf16 else f32      # gelu-block compute dtype

  x = x_ref[...]                                                 # (16, tb) bf16

  # embed(x) + (embed bias + wpe[0]);  h is (32, tb) f32, batch on lanes.
  h = jnp.dot(wemb_ref[...], x, preferred_element_type=f32)
  h = h + b_ref[0:N_EMBD, :]

  for l in range(N_LAYER):                  # tiny fixed trip count: unrolled
    w_off = l * _W32_STRIDE
    b_off = N_EMBD + l * _B_STRIDE

    # -- attention sub-block (seq_len == 1: softmax over one key == 1, so
    #    attention reduces to the folded ln1*V*c_proj projection) -----------
    hn = _normalize_feat(h).astype(bf16)
    attn = jnp.dot(w32_ref[w_off:w_off + N_EMBD, :], hn,
                   preferred_element_type=f32)
    h = h + attn + b_ref[b_off:b_off + N_EMBD, :]

    # -- MLP sub-block (ln2 affine folded into c_fc).  The gelu block runs
    #    in bf16 on v6e/v7x (bf16 VPU/EUP), f32 on v5e. ---------------------
    hn = _normalize_feat(h).astype(bf16)
    ff = jnp.dot(w32_ref[w_off + N_EMBD:w_off + N_EMBD + N_INNER, :], hn,
                 preferred_element_type=cdt)                     # (128, tb)
    ff = _gelu_new(
        ff + b_ref[b_off + N_EMBD:b_off + N_EMBD + N_INNER, :].astype(cdt))
    mlp = jnp.dot(w128_ref[l * N_EMBD:(l + 1) * N_EMBD, :], ff.astype(bf16),
                  preferred_element_type=f32)                    # (32, tb)
    h = h + mlp + b_ref[b_off + N_EMBD + N_INNER:
                        b_off + 2 * N_EMBD + N_INNER, :]

  # -- final LayerNorm (affine folded into read-out) + read-out -------------
  # The batch-on-lanes layout yields the lane-dense (1, tb) output row with a
  # plain NN dot (no transpose / NT contraction needed).
  hn = _normalize_feat(h).astype(bf16)
  pred = jnp.dot(w32_ref[_W32_RO_OFF:_W32_RO_OFF + 1, :], hn,
                 preferred_element_type=f32)                     # (1, tb)
  out_ref[...] = pred + b_ref[_B_RO_OFF:_B_RO_OFF + 1, :]


# --------------------------------------------------------------------------
# Weight folding / packing (wrapper side, plain JAX)
# --------------------------------------------------------------------------
def prepare_weights(params):
  """Fold Q/K away, LN affines and biases into matmul weights; pack slabs
  pre-transposed for the batch-on-lanes (W^T @ activation) layout."""
  p = {k: jnp.asarray(v, jnp.float32) for k, v in params.items()}

  w_emb_t = p["embed_w"].T                                       # (32, 16)
  bias_cols = [(p["embed_b"] + p["wpe"]).reshape(-1)]            # (32,)
  w32_blocks = []
  w128_blocks = []

  for l in range(N_LAYER):
    g1 = p["ln1_g"][l].reshape(-1); b1 = p["ln1_b"][l].reshape(-1)
    g2 = p["ln2_g"][l].reshape(-1); b2 = p["ln2_b"][l].reshape(-1)

    # attention: only the V columns of c_attn matter at seq_len == 1
    w_v = p["attn_w"][l][:, 2 * N_EMBD:]                         # (32, 32)
    b_v = p["attn_b"][l].reshape(-1)[2 * N_EMBD:]                # (32,)
    w_vp = w_v @ p["attnp_w"][l]                                 # V . c_proj
    b_vp = b_v @ p["attnp_w"][l] + p["attnp_b"][l].reshape(-1)
    wa_attn = g1[:, None] * w_vp                                 # fold ln1 gamma
    b_attn = b1 @ w_vp + b_vp                                    # fold ln1 beta

    # MLP: fold ln2 affine into c_fc
    w_fc = g2[:, None] * p["fc_w"][l]                            # (32, 128)
    b_fc = b2 @ p["fc_w"][l] + p["fc_b"][l].reshape(-1)          # (128,)

    w32_blocks += [wa_attn.T, w_fc.T]                            # (32,32),(128,32)
    w128_blocks.append(p["mlpp_w"][l].T)                         # (32, 128)
    bias_cols += [b_attn, b_fc, p["mlpp_b"][l].reshape(-1)]

  # read-out: fold ln_f affine into the read-out vector / scalar bias
  gf = p["lnf_g"].reshape(-1); bf = p["lnf_b"].reshape(-1)
  ro_w = p["ro_w"].reshape(-1)                                   # (32,)
  ro_vec = gf * ro_w
  ro_b = jnp.sum(bf * ro_w) + p["ro_b"].reshape(-1)[0]
  w32_blocks.append(ro_vec[None, :])                             # (1, 32)
  bias_cols.append(jnp.reshape(ro_b, (1,)))

  w32 = jnp.concatenate(w32_blocks, axis=0)                      # (321, 32)
  w32 = jnp.pad(w32, ((0, _round_up(w32.shape[0], 16) - w32.shape[0]), (0, 0)))
  w128 = jnp.concatenate(w128_blocks, axis=0)                    # (64, 128)
  bias = jnp.concatenate(bias_cols, axis=0)[:, None]             # (417, 1)
  bias = jnp.pad(bias,
                 ((0, _round_up(bias.shape[0], 8) - bias.shape[0]), (0, 0)))
  return (w_emb_t.astype(jnp.bfloat16), w32.astype(jnp.bfloat16),
          w128.astype(jnp.bfloat16), bias)


# --------------------------------------------------------------------------
# Tile selection (generation-aware)
# --------------------------------------------------------------------------
def _select_tb(b, gen, tb_req=None):
  b8 = _round_up(b, 8)
  cap = _MAX_TB if tb_req is None else max(8, _round_up(tb_req, 8))
  # v7x has 2 TensorCores: make sure the "parallel" grid has >= 2 steps so
  # both get work.  v5e/v6e have 1 TC -> one big tile minimises step overhead.
  min_steps = 2 if (gen >= 7 and b8 >= 256) else 1
  steps = max(min_steps, pl.cdiv(b8, cap))
  if steps == 1:
    return b8                                  # one full-array tile
  # multi-step grid: tiles must be lane-aligned (multiple of 128) so the
  # (1, tb) output blocks stay unmasked lane-dense stores.
  return min(_round_up(pl.cdiv(b8, steps), 128), _round_up(cap, 128))


# --------------------------------------------------------------------------
# Wrapper
# --------------------------------------------------------------------------
def transformer_forward(xs, ys, params, *, tb=None):
  """TransformerModel.forward for n_positions == 1.

  xs: (B, 1, N_DIMS) f32, ys: (B, 1) f32 -> preds (B, 1) f32.
  """
  # TODO(synk): general n_positions > 1 causal self-attention is not
  # implemented; this kernel specialises to the seq_len == 1 configuration.
  assert xs.ndim == 3 and xs.shape[1] == 1 and xs.shape[2] == N_DIMS
  assert ys.shape == xs.shape[:2]
  seq = jnp.concatenate([xs, ys[..., None]], axis=-1)            # _combine
  b = seq.shape[0]

  gen = _tpu_generation()
  elemwise_bf16 = gen >= 6                     # bf16 VPU/EUP on v6e/v7x only
  tb_sel = _select_tb(b, gen, tb)
  b_pad = _round_up(_round_up(b, 8), tb_sel)
  grid = b_pad // tb_sel

  # Batch on lanes: stream x as a bf16 (N_FEAT, B) slab (half the per-step
  # DMA bytes of f32; no in-kernel cast).  Zero-padded columns pass through
  # LayerNorm finitely (eps) and are sliced off below.
  xt = seq.reshape(b, N_FEAT).T.astype(jnp.bfloat16)             # (16, B)
  if b_pad != b:
    xt = jnp.pad(xt, ((0, 0), (0, b_pad - b)))

  w_emb, w32, w128, bias = prepare_weights(params)

  def _resident(arr):
    # Constant index map -> block index never changes across grid steps, so
    # Pallas fetches these slabs once (no per-step re-DMA).
    return pl.BlockSpec(arr.shape, lambda i: (0, 0))

  kernel = partial(transformer_kernel, elemwise_bf16=elemwise_bf16)

  out = pl.pallas_call(
      kernel,
      out_shape=jax.ShapeDtypeStruct((1, b_pad), jnp.float32),
      grid=(grid,),
      in_specs=[
          pl.BlockSpec((N_FEAT, tb_sel), lambda i: (0, i)),  # x batch tile
          _resident(w_emb), _resident(w32),
          _resident(w128), _resident(bias),
      ],
      out_specs=pl.BlockSpec((1, tb_sel), lambda i: (0, i)),  # lane-dense row
      compiler_params=pltpu.CompilerParams(
          dimension_semantics=("parallel",),
          vmem_limit_bytes=_VMEM_LIMIT),
  )(xt, w_emb, w32, w128, bias)

  return out[0, :b].reshape(b, 1)                            # == preds


# --------------------------------------------------------------------------
# Synthetic params + pure-JAX reference (original, unfolded math)
# --------------------------------------------------------------------------
def init_params(key):
  """Synthetic parameters, shapes per the torch module (x @ W orientation).

  LayerNorm gains/biases are randomised (not 1/0) so the affine folding is
  actually exercised by the correctness check.
  """
  ks = jax.random.split(key, 32)
  it = iter(range(32))
  std = 0.02

  def rnd(shape, s=std):
    return (s * jax.random.normal(ks[next(it)], shape)).astype(jnp.float32)

  return {
      "embed_w": rnd((N_FEAT, N_EMBD)),             # nn.Linear(n_dims+1, n_embd)
      "embed_b": rnd((1, N_EMBD)),
      "wpe": rnd((1, N_EMBD)),                      # position-0 embedding
      "ln1_g": 1.0 + rnd((N_LAYER, 1, N_EMBD), 0.1),
      "ln1_b": rnd((N_LAYER, 1, N_EMBD)),
      "attn_w": rnd((N_LAYER, N_EMBD, 3 * N_EMBD)), # GPT-2 Conv1D c_attn
      "attn_b": rnd((N_LAYER, 1, 3 * N_EMBD)),
      "attnp_w": rnd((N_LAYER, N_EMBD, N_EMBD)),    # attn c_proj
      "attnp_b": rnd((N_LAYER, 1, N_EMBD)),
      "ln2_g": 1.0 + rnd((N_LAYER, 1, N_EMBD), 0.1),
      "ln2_b": rnd((N_LAYER, 1, N_EMBD)),
      "fc_w": rnd((N_LAYER, N_EMBD, N_INNER)),      # mlp c_fc
      "fc_b": rnd((N_LAYER, 1, N_INNER)),
      "mlpp_w": rnd((N_LAYER, N_INNER, N_EMBD)),    # mlp c_proj
      "mlpp_b": rnd((N_LAYER, 1, N_EMBD)),
      "lnf_g": 1.0 + rnd((1, N_EMBD), 0.1),
      "lnf_b": rnd((1, N_EMBD)),
      "ro_w": rnd((N_EMBD, 1)),                     # nn.Linear(n_embd, 1)
      "ro_b": rnd((1, 1)),
  }


def _layer_norm_ref(x, g, b):
  mean = jnp.mean(x, axis=-1, keepdims=True)
  xc = x - mean
  var = jnp.mean(xc * xc, axis=-1, keepdims=True)
  return xc * jax.lax.rsqrt(var + LN_EPS) * g + b


def reference_forward(xs, ys, p):
  """Pure-JAX forward with the original (unfolded, f32) math."""
  seq = jnp.concatenate([xs, ys[..., None]], axis=-1)
  x = seq[:, 0, :]
  h = x @ p["embed_w"] + p["embed_b"] + p["wpe"]
  for l in range(N_LAYER):
    hn = _layer_norm_ref(h, p["ln1_g"][l], p["ln1_b"][l])
    qkv = hn @ p["attn_w"][l] + p["attn_b"][l]
    v = qkv[:, 2 * N_EMBD:]          # causal softmax over a single key == 1
    h = h + v @ p["attnp_w"][l] + p["attnp_b"][l]
    hn = _layer_norm_ref(h, p["ln2_g"][l], p["ln2_b"][l])
    ff = _gelu_new(hn @ p["fc_w"][l] + p["fc_b"][l])
    h = h + ff @ p["mlpp_w"][l] + p["mlpp_b"][l]
  h = _layer_norm_ref(h, p["lnf_g"], p["lnf_b"])
  return h @ p["ro_w"] + p["ro_b"]   # (B, 1) == preds for n_positions == 1


if __name__ == "__main__":
  key = jax.random.PRNGKey(0)
  k_par, k_xs, k_ys = jax.random.split(key, 3)

  batch, n_pos = 250, 1              # ragged vs tb=128 -> exercises padding
  params = init_params(k_par)
  xs = jax.random.normal(k_xs, (batch, n_pos, N_DIMS), dtype=jnp.float32)
  ys = jax.random.normal(k_ys, (batch, n_pos), dtype=jnp.float32)

  pred_tiled = transformer_forward(xs, ys, params, tb=128)   # >= 2 grid steps
  pred_whole = transformer_forward(xs, ys, params)           # default tiling
  pred_tiled, pred_whole = jax.block_until_ready((pred_tiled, pred_whole))

  ref = reference_forward(xs, ys, params)
  assert pred_tiled.shape == (batch, n_pos)
  assert jnp.allclose(pred_tiled, pred_whole, rtol=1e-4, atol=1e-6), (
      "tiled vs default-tile mismatch")
  assert jnp.allclose(pred_tiled, ref, rtol=5e-2, atol=5e-3), (
      float(jnp.max(jnp.abs(pred_tiled - ref))))

  print("KERNEL_OK")
</pallas_src>

<mosaic_0001>
module attributes {stable_mosaic.version = 11 : i64} {
  func.func @transformer_kernel(%arg0: i32, %arg1: memref<16x128xbf16, #tpu.memory_space<vmem>>, %arg2: memref<32x16xbf16, #tpu.memory_space<vmem>>, %arg3: memref<336x32xbf16, #tpu.memory_space<vmem>>, %arg4: memref<64x128xbf16, #tpu.memory_space<vmem>>, %arg5: memref<424x1xf32, #tpu.memory_space<vmem>>, %arg6: memref<1x128xf32, #tpu.memory_space<vmem>>) attributes {dimension_semantics = [#tpu.dimension_semantics<parallel>], iteration_bounds = array<i64: 2>, scalar_prefetch = 0 : i64, scratch_operands = 0 : i64, tpu.core_type = #tpu.core_type<tc>, window_params = [{transform_indices = @transform_0, window_bounds = array<i64: 16, 128>}, {pipeline_mode = #tpu.pipeline_mode<synchronous>, transform_indices = @transform_1, window_bounds = array<i64: 32, 16>}, {pipeline_mode = #tpu.pipeline_mode<synchronous>, transform_indices = @transform_2, window_bounds = array<i64: 336, 32>}, {pipeline_mode = #tpu.pipeline_mode<synchronous>, transform_indices = @transform_3, window_bounds = array<i64: 64, 128>}, {pipeline_mode = #tpu.pipeline_mode<synchronous>, transform_indices = @transform_4, window_bounds = array<i64: 424, 1>}, {transform_indices = @transform_5, window_bounds = array<i64: 1, 128>}]} {
    %c0 = arith.constant 0 : index
    %c0_0 = arith.constant 0 : index
    %0 = vector.load %arg1[%c0, %c0_0] : memref<16x128xbf16, #tpu.memory_space<vmem>>, vector<16x128xbf16>
    %c0_1 = arith.constant 0 : index
    %c0_2 = arith.constant 0 : index
    %1 = vector.load %arg2[%c0_1, %c0_2] : memref<32x16xbf16, #tpu.memory_space<vmem>>, vector<32x16xbf16>
    %cst = arith.constant dense<0.000000e+00> : vector<32x128xf32>
    %2 = tpu.matmul %1, %0, %cst {dimension_numbers = #tpu.dot_dimension_numbers<[1], [0], [0], [1], [0, 0, 1, 1], [], []>} : vector<32x16xbf16>, vector<16x128xbf16>, vector<32x128xf32> -> vector<32x128xf32>
    %c0_3 = arith.constant 0 : index
    %c0_4 = arith.constant 0 : index
    %3 = vector.load %arg5[%c0_3, %c0_4] : memref<424x1xf32, #tpu.memory_space<vmem>>, vector<32x1xf32>
    %4 = vector.broadcast %3 : vector<32x1xf32> to vector<32x128xf32>
    %5 = arith.addf %2, %4 : vector<32x128xf32>
    %cst_5 = arith.constant dense<0.000000e+00> : vector<128xf32>
    %6 = vector.multi_reduction <add>, %5, %cst_5 [0] : vector<32x128xf32> to vector<128xf32>
    %7 = vector.shape_cast %6 : vector<128xf32> to vector<1x128xf32>
    %cst_6 = arith.constant 3.200000e+01 : f32
    %8 = vector.broadcast %cst_6 : f32 to vector<1x128xf32>
    %9 = arith.divf %7, %8 : vector<1x128xf32>
    %10 = vector.broadcast %9 : vector<1x128xf32> to vector<32x128xf32>
    %11 = arith.subf %5, %10 : vector<32x128xf32>
    %12 = arith.mulf %11, %11 : vector<32x128xf32>
    %cst_7 = arith.constant dense<0.000000e+00> : vector<128xf32>
    %13 = vector.multi_reduction <add>, %12, %cst_7 [0] : vector<32x128xf32> to vector<128xf32>
    %14 = vector.shape_cast %13 : vector<128xf32> to vector<1x128xf32>
    %cst_8 = arith.constant 3.200000e+01 : f32
    %15 = vector.broadcast %cst_8 : f32 to vector<1x128xf32>
    %16 = arith.divf %14, %15 : vector<1x128xf32>
    %cst_9 = arith.constant 9.99999974E-6 : f32
    %17 = vector.broadcast %cst_9 : f32 to vector<1x128xf32>
    %18 = arith.addf %16, %17 : vector<1x128xf32>
    %19 = math.rsqrt %18 : vector<1x128xf32>
    %20 = vector.broadcast %19 : vector<1x128xf32> to vector<32x128xf32>
    %21 = arith.mulf %11, %20 : vector<32x128xf32>
    %22 = arith.truncf %21 : vector<32x128xf32> to vector<32x128xbf16>
    %c0_10 = arith.constant 0 : index
    %c0_11 = arith.constant 0 : index
    %23 = vector.load %arg3[%c0_10, %c0_11] : memref<336x32xbf16, #tpu.memory_space<vmem>>, vector<32x32xbf16>
    %cst_12 = arith.constant dense<0.000000e+00> : vector<32x128xf32>
    %24 = tpu.matmul %23, %22, %cst_12 {dimension_numbers = #tpu.dot_dimension_numbers<[1], [0], [0], [1], [0, 0, 1, 1], [], []>} : vector<32x32xbf16>, vector<32x128xbf16>, vector<32x128xf32> -> vector<32x128xf32>
    %25 = arith.addf %5, %24 : vector<32x128xf32>
    %c32 = arith.constant 32 : index
    %c0_13 = arith.constant 0 : index
    %26 = vector.load %arg5[%c32, %c0_13] : memref<424x1xf32, #tpu.memory_space<vmem>>, vector<32x1xf32>
    %27 = vector.broadcast %26 : vector<32x1xf32> to vector<32x128xf32>
    %28 = arith.addf %25, %27 : vector<32x128xf32>
    %cst_14 = arith.constant dense<0.000000e+00> : vector<128xf32>
    %29 = vector.multi_reduction <add>, %28, %cst_14 [0] : vector<32x128xf32> to vector<128xf32>
    %30 = vector.shape_cast %29 : vector<128xf32> to vector<1x128xf32>
    %cst_15 = arith.constant 3.200000e+01 : f32
    %31 = vector.broadcast %cst_15 : f32 to vector<1x128xf32>
    %32 = arith.divf %30, %31 : vector<1x128xf32>
    %33 = vector.broadcast %32 : vector<1x128xf32> to vector<32x128xf32>
    %34 = arith.subf %28, %33 : vector<32x128xf32>
    %35 = arith.mulf %34, %34 : vector<32x128xf32>
    %cst_16 = arith.constant dense<0.000000e+00> : vector<128xf32>
    %36 = vector.multi_reduction <add>, %35, %cst_16 [0] : vector<32x128xf32> to vector<128xf32>
    %37 = vector.shape_cast %36 : vector<128xf32> to vector<1x128xf32>
    %cst_17 = arith.constant 3.200000e+01 : f32
    %38 = vector.broadcast %cst_17 : f32 to vector<1x128xf32>
    %39 = arith.divf %37, %38 : vector<1x128xf32>
    %cst_18 = arith.constant 9.99999974E-6 : f32
    %40 = vector.broadcast %cst_18 : f32 to vector<1x128xf32>
    %41 = arith.addf %39, %40 : vector<1x128xf32>
    %42 = math.rsqrt %41 : vector<1x128xf32>
    %43 = vector.broadcast %42 : vector<1x128xf32> to vector<32x128xf32>
    %44 = arith.mulf %34, %43 : vector<32x128xf32>
    %45 = arith.truncf %44 : vector<32x128xf32> to vector<32x128xbf16>
    %c32_19 = arith.constant 32 : index
    %c0_20 = arith.constant 0 : index
    %46 = vector.load %arg3[%c32_19, %c0_20] : memref<336x32xbf16, #tpu.memory_space<vmem>>, vector<128x32xbf16>
    %cst_21 = arith.constant dense<0.000000e+00> : vector<128x128xf32>
    %47 = tpu.matmul %46, %45, %cst_21 {dimension_numbers = #tpu.dot_dimension_numbers<[1], [0], [0], [1], [0, 0, 1, 1], [], []>} : vector<128x32xbf16>, vector<32x128xbf16>, vector<128x128xf32> -> vector<128x128xf32>
    %c64 = arith.constant 64 : index
    %c0_22 = arith.constant 0 : index
    %48 = vector.load %arg5[%c64, %c0_22] : memref<424x1xf32, #tpu.memory_space<vmem>>, vector<128x1xf32>
    %49 = vector.broadcast %48 : vector<128x1xf32> to vector<128x128xf32>
    %50 = arith.addf %47, %49 : vector<128x128xf32>
    %cst_23 = arith.constant 5.000000e-01 : f32
    %51 = vector.broadcast %cst_23 : f32 to vector<128x128xf32>
    %52 = arith.mulf %51, %50 : vector<128x128xf32>
    %cst_24 = arith.constant 4.471500e-02 : f32
    %53 = vector.broadcast %cst_24 : f32 to vector<128x128xf32>
    %54 = arith.mulf %53, %50 : vector<128x128xf32>
    %55 = arith.mulf %54, %50 : vector<128x128xf32>
    %56 = arith.mulf %55, %50 : vector<128x128xf32>
    %57 = arith.addf %50, %56 : vector<128x128xf32>
    %cst_25 = arith.constant 0.797884583 : f32
    %58 = vector.broadcast %cst_25 : f32 to vector<128x128xf32>
    %59 = arith.mulf %58, %57 : vector<128x128xf32>
    %60 = math.tanh %59 : vector<128x128xf32>
    %cst_26 = arith.constant 1.000000e+00 : f32
    %61 = vector.broadcast %cst_26 : f32 to vector<128x128xf32>
    %62 = arith.addf %61, %60 : vector<128x128xf32>
    %63 = arith.mulf %52, %62 : vector<128x128xf32>
    %c0_27 = arith.constant 0 : index
    %c0_28 = arith.constant 0 : index
    %64 = vector.load %arg4[%c0_27, %c0_28] : memref<64x128xbf16, #tpu.memory_space<vmem>>, vector<32x128xbf16>
    %65 = arith.truncf %63 : vector<128x128xf32> to vector<128x128xbf16>
    %cst_29 = arith.constant dense<0.000000e+00> : vector<32x128xf32>
    %66 = tpu.matmul %64, %65, %cst_29 {dimension_numbers = #tpu.dot_dimension_numbers<[1], [0], [0], [1], [0, 0, 1, 1], [], []>} : vector<32x128xbf16>, vector<128x128xbf16>, vector<32x128xf32> -> vector<32x128xf32>
    %67 = arith.addf %28, %66 : vector<32x128xf32>
    %c192 = arith.constant 192 : index
    %c0_30 = arith.constant 0 : index
    %68 = vector.load %arg5[%c192, %c0_30] : memref<424x1xf32, #tpu.memory_space<vmem>>, vector<32x1xf32>
    %69 = vector.broadcast %68 : vector<32x1xf32> to vector<32x128xf32>
    %70 = arith.addf %67, %69 : vector<32x128xf32>
    %cst_31 = arith.constant dense<0.000000e+00> : vector<128xf32>
    %71 = vector.multi_reduction <add>, %70, %cst_31 [0] : vector<32x128xf32> to vector<128xf32>
    %72 = vector.shape_cast %71 : vector<128xf32> to vector<1x128xf32>
    %cst_32 = arith.constant 3.200000e+01 : f32
    %73 = vector.broadcast %cst_32 : f32 to vector<1x128xf32>
    %74 = arith.divf %72, %73 : vector<1x128xf32>
    %75 = vector.broadcast %74 : vector<1x128xf32> to vector<32x128xf32>
    %76 = arith.subf %70, %75 : vector<32x128xf32>
    %77 = arith.mulf %76, %76 : vector<32x128xf32>
    %cst_33 = arith.constant dense<0.000000e+00> : vector<128xf32>
    %78 = vector.multi_reduction <add>, %77, %cst_33 [0] : vector<32x128xf32> to vector<128xf32>
    %79 = vector.shape_cast %78 : vector<128xf32> to vector<1x128xf32>
    %cst_34 = arith.constant 3.200000e+01 : f32
    %80 = vector.broadcast %cst_34 : f32 to vector<1x128xf32>
    %81 = arith.divf %79, %80 : vector<1x128xf32>
    %cst_35 = arith.constant 9.99999974E-6 : f32
    %82 = vector.broadcast %cst_35 : f32 to vector<1x128xf32>
    %83 = arith.addf %81, %82 : vector<1x128xf32>
    %84 = math.rsqrt %83 : vector<1x128xf32>
    %85 = vector.broadcast %84 : vector<1x128xf32> to vector<32x128xf32>
    %86 = arith.mulf %76, %85 : vector<32x128xf32>
    %87 = arith.truncf %86 : vector<32x128xf32> to vector<32x128xbf16>
    %c160 = arith.constant 160 : index
    %c0_36 = arith.constant 0 : index
    %88 = vector.load %arg3[%c160, %c0_36] : memref<336x32xbf16, #tpu.memory_space<vmem>>, vector<32x32xbf16>
    %cst_37 = arith.constant dense<0.000000e+00> : vector<32x128xf32>
    %89 = tpu.matmul %88, %87, %cst_37 {dimension_numbers = #tpu.dot_dimension_numbers<[1], [0], [0], [1], [0, 0, 1, 1], [], []>} : vector<32x32xbf16>, vector<32x128xbf16>, vector<32x128xf32> -> vector<32x128xf32>
    %90 = arith.addf %70, %89 : vector<32x128xf32>
    %c224 = arith.constant 224 : index
    %c0_38 = arith.constant 0 : index
    %91 = vector.load %arg5[%c224, %c0_38] : memref<424x1xf32, #tpu.memory_space<vmem>>, vector<32x1xf32>
    %92 = vector.broadcast %91 : vector<32x1xf32> to vector<32x128xf32>
    %93 = arith.addf %90, %92 : vector<32x128xf32>
    %cst_39 = arith.constant dense<0.000000e+00> : vector<128xf32>
    %94 = vector.multi_reduction <add>, %93, %cst_39 [0] : vector<32x128xf32> to vector<128xf32>
    %95 = vector.shape_cast %94 : vector<128xf32> to vector<1x128xf32>
    %cst_40 = arith.constant 3.200000e+01 : f32
    %96 = vector.broadcast %cst_40 : f32 to vector<1x128xf32>
    %97 = arith.divf %95, %96 : vector<1x128xf32>
    %98 = vector.broadcast %97 : vector<1x128xf32> to vector<32x128xf32>
    %99 = arith.subf %93, %98 : vector<32x128xf32>
    %100 = arith.mulf %99, %99 : vector<32x128xf32>
    %cst_41 = arith.constant dense<0.000000e+00> : vector<128xf32>
    %101 = vector.multi_reduction <add>, %100, %cst_41 [0] : vector<32x128xf32> to vector<128xf32>
    %102 = vector.shape_cast %101 : vector<128xf32> to vector<1x128xf32>
    %cst_42 = arith.constant 3.200000e+01 : f32
    %103 = vector.broadcast %cst_42 : f32 to vector<1x128xf32>
    %104 = arith.divf %102, %103 : vector<1x128xf32>
    %cst_43 = arith.constant 9.99999974E-6 : f32
    %105 = vector.broadcast %cst_43 : f32 to vector<1x128xf32>
    %106 = arith.addf %104, %105 : vector<1x128xf32>
    %107 = math.rsqrt %106 : vector<1x128xf32>
    %108 = vector.broadcast %107 : vector<1x128xf32> to vector<32x128xf32>
    %109 = arith.mulf %99, %108 : vector<32x128xf32>
    %110 = arith.truncf %109 : vector<32x128xf32> to vector<32x128xbf16>
    %c192_44 = arith.constant 192 : index
    %c0_45 = arith.constant 0 : index
    %111 = vector.load %arg3[%c192_44, %c0_45] : memref<336x32xbf16, #tpu.memory_space<vmem>>, vector<128x32xbf16>
    %cst_46 = arith.constant dense<0.000000e+00> : vector<128x128xf32>
    %112 = tpu.matmul %111, %110, %cst_46 {dimension_numbers = #tpu.dot_dimension_numbers<[1], [0], [0], [1], [0, 0, 1, 1], [], []>} : vector<128x32xbf16>, vector<32x128xbf16>, vector<128x128xf32> -> vector<128x128xf32>
    %c256 = arith.constant 256 : index
    %c0_47 = arith.constant 0 : index
    %113 = vector.load %arg5[%c256, %c0_47] : memref<424x1xf32, #tpu.memory_space<vmem>>, vector<128x1xf32>
    %114 = vector.broadcast %113 : vector<128x1xf32> to vector<128x128xf32>
    %115 = arith.addf %112, %114 : vector<128x128xf32>
    %cst_48 = arith.constant 5.000000e-01 : f32
    %116 = vector.broadcast %cst_48 : f32 to vector<128x128xf32>
    %117 = arith.mulf %116, %115 : vector<128x128xf32>
    %cst_49 = arith.constant 4.471500e-02 : f32
    %118 = vector.broadcast %cst_49 : f32 to vector<128x128xf32>
    %119 = arith.mulf %118, %115 : vector<128x128xf32>
    %120 = arith.mulf %119, %115 : vector<128x128xf32>
    %121 = arith.mulf %120, %115 : vector<128x128xf32>
    %122 = arith.addf %115, %121 : vector<128x128xf32>
    %cst_50 = arith.constant 0.797884583 : f32
    %123 = vector.broadcast %cst_50 : f32 to vector<128x128xf32>
    %124 = arith.mulf %123, %122 : vector<128x128xf32>
    %125 = math.tanh %124 : vector<128x128xf32>
    %cst_51 = arith.constant 1.000000e+00 : f32
    %126 = vector.broadcast %cst_51 : f32 to vector<128x128xf32>
    %127 = arith.addf %126, %125 : vector<128x128xf32>
    %128 = arith.mulf %117, %127 : vector<128x128xf32>
    %c32_52 = arith.constant 32 : index
    %c0_53 = arith.constant 0 : index
    %129 = vector.load %arg4[%c32_52, %c0_53] : memref<64x128xbf16, #tpu.memory_space<vmem>>, vector<32x128xbf16>
    %130 = arith.truncf %128 : vector<128x128xf32> to vector<128x128xbf16>
    %cst_54 = arith.constant dense<0.000000e+00> : vector<32x128xf32>
    %131 = tpu.matmul %129, %130, %cst_54 {dimension_numbers = #tpu.dot_dimension_numbers<[1], [0], [0], [1], [0, 0, 1, 1], [], []>} : vector<32x128xbf16>, vector<128x128xbf16>, vector<32x128xf32> -> vector<32x128xf32>
    %132 = arith.addf %93, %131 : vector<32x128xf32>
    %c384 = arith.constant 384 : index
    %c0_55 = arith.constant 0 : index
    %133 = vector.load %arg5[%c384, %c0_55] : memref<424x1xf32, #tpu.memory_space<vmem>>, vector<32x1xf32>
    %134 = vector.broadcast %133 : vector<32x1xf32> to vector<32x128xf32>
    %135 = arith.addf %132, %134 : vector<32x128xf32>
    %cst_56 = arith.constant dense<0.000000e+00> : vector<128xf32>
    %136 = vector.multi_reduction <add>, %135, %cst_56 [0] : vector<32x128xf32> to vector<128xf32>
    %137 = vector.shape_cast %136 : vector<128xf32> to vector<1x128xf32>
    %cst_57 = arith.constant 3.200000e+01 : f32
    %138 = vector.broadcast %cst_57 : f32 to vector<1x128xf32>
    %139 = arith.divf %137, %138 : vector<1x128xf32>
    %140 = vector.broadcast %139 : vector<1x128xf32> to vector<32x128xf32>
    %141 = arith.subf %135, %140 : vector<32x128xf32>
    %142 = arith.mulf %141, %141 : vector<32x128xf32>
    %cst_58 = arith.constant dense<0.000000e+00> : vector<128xf32>
    %143 = vector.multi_reduction <add>, %142, %cst_58 [0] : vector<32x128xf32> to vector<128xf32>
    %144 = vector.shape_cast %143 : vector<128xf32> to vector<1x128xf32>
    %cst_59 = arith.constant 3.200000e+01 : f32
    %145 = vector.broadcast %cst_59 : f32 to vector<1x128xf32>
    %146 = arith.divf %144, %145 : vector<1x128xf32>
    %cst_60 = arith.constant 9.99999974E-6 : f32
    %147 = vector.broadcast %cst_60 : f32 to vector<1x128xf32>
    %148 = arith.addf %146, %147 : vector<1x128xf32>
    %149 = math.rsqrt %148 : vector<1x128xf32>
    %150 = vector.broadcast %149 : vector<1x128xf32> to vector<32x128xf32>
    %151 = arith.mulf %141, %150 : vector<32x128xf32>
    %152 = arith.truncf %151 : vector<32x128xf32> to vector<32x128xbf16>
    %c320 = arith.constant 320 : index
    %c0_61 = arith.constant 0 : index
    %153 = vector.load %arg3[%c320, %c0_61] : memref<336x32xbf16, #tpu.memory_space<vmem>>, vector<1x32xbf16>
    %cst_62 = arith.constant dense<0.000000e+00> : vector<1x128xf32>
    %154 = tpu.matmul %153, %152, %cst_62 {dimension_numbers = #tpu.dot_dimension_numbers<[1], [0], [0], [1], [0, 0, 1, 1], [], []>} : vector<1x32xbf16>, vector<32x128xbf16>, vector<1x128xf32> -> vector<1x128xf32>
    %c416 = arith.constant 416 : index
    %c0_63 = arith.constant 0 : index
    %155 = vector.load %arg5[%c416, %c0_63] : memref<424x1xf32, #tpu.memory_space<vmem>>, vector<1x1xf32>
    %156 = vector.broadcast %155 : vector<1x1xf32> to vector<1x128xf32>
    %157 = arith.addf %154, %156 : vector<1x128xf32>
    %c0_64 = arith.constant 0 : index
    %c0_65 = arith.constant 0 : index
    %158 = vector.load %arg6[%c0_64, %c0_65] : memref<1x128xf32, #tpu.memory_space<vmem>>, vector<1x128xf32>
    tpu.vector_store %arg6[%c0_64, %c0_65], %157 {strides = array<i32>} : memref<1x128xf32, #tpu.memory_space<vmem>>, vector<1x128xf32>,
    return
  }
  func.func @transform_0(%arg0: i32) -> (i32, i32) {
    %c0_i32 = arith.constant 0 : i32
    %c0_i32_0 = arith.constant 0 : i32
    return %c0_i32, %arg0 : i32, i32
  }
  func.func @transform_1(%arg0: i32) -> (i32, i32) {
    %c0_i32 = arith.constant 0 : i32
    %c0_i32_0 = arith.constant 0 : i32
    %c0_i32_1 = arith.constant 0 : i32
    return %c0_i32, %c0_i32_0 : i32, i32
  }
  func.func @transform_2(%arg0: i32) -> (i32, i32) {
    %c0_i32 = arith.constant 0 : i32
    %c0_i32_0 = arith.constant 0 : i32
    %c0_i32_1 = arith.constant 0 : i32
    return %c0_i32, %c0_i32_0 : i32, i32
  }
  func.func @transform_3(%arg0: i32) -> (i32, i32) {
    %c0_i32 = arith.constant 0 : i32
    %c0_i32_0 = arith.constant 0 : i32
    %c0_i32_1 = arith.constant 0 : i32
    return %c0_i32, %c0_i32_0 : i32, i32
  }
  func.func @transform_4(%arg0: i32) -> (i32, i32) {
    %c0_i32 = arith.constant 0 : i32
    %c0_i32_0 = arith.constant 0 : i32
    %c0_i32_1 = arith.constant 0 : i32
    return %c0_i32, %c0_i32_0 : i32, i32
  }
  func.func @transform_5(%arg0: i32) -> (i32, i32) {
    %c0_i32 = arith.constant 0 : i32
    %c0_i32_0 = arith.constant 0 : i32
    return %c0_i32, %arg0 : i32, i32
  }
}

</mosaic_0001>

<bundles_post_ra>
// kernel: tpu_custom_call.1
= control target key start
LH: loop header
LB: loop body
LE: loop exit
PB: predicated region body
PF: predicated region fallthrough
CT: control target
= control target key end

     0   :  { %10 = vsyncpa [#allocation4], 0  ;;  %s3013_s0 = inlined_call_operand.vmem [shape: bf16[16,256], index: 0, kind: input, shape index: {}]   ;;  %s3014_s1 = inlined_call_operand.vmem [shape: bf16[32,16], index: 1, kind: input, shape index: {}]   ;;  %s3015_s2 = inlined_call_operand.vmem [shape: bf16[336,32], index: 2, kind: input, shape index: {}]   ;;  %s3016_s3 = inlined_call_operand.vmem [shape: bf16[64,128], index: 3, kind: input, shape index: {}]   ;;  %s3017_s4 = inlined_call_operand.vmem [shape: f32[424,1], index: 4, kind: input, shape index: {}]   ;;  %s3018_s5 = inlined_call_operand.hbm [shape: f32[1,256], index: 5, kind: output, shape index: {}]  }
   0x1   :  { %12 = vsyncpa [#allocation4 + $0x1], 0  ;;  %s2390_s18 = smov 0   ;;  %s2392_s19 = smov 0  }
   0x2   :  { %s2394_s20 = smov 0   ;;  %s2396_s21 = smov 0  }
   0x3 LB: > { %s1922_s22 = sadd.s32 4294967295, %s2354_s21   ;;  %s1923_s23 = sadd.s32 4294967294, %s2354_s21   ;;  %s2354_s21 = sphi %s2396_s21, %s3024_s21   ;;  %s2350_s20 = sphi %s2394_s20, %s3023_s20   ;;  %s2346_s19 = sphi %s2392_s19, %s3022_s19   ;;  %s2342_s18 = sphi %s2390_s18, %s3021_s18  }
   0x4   : > { %s2413_s24 = sadd.s32 1, %s2354_s21   ;;  %s25_s25 = sadd.s32 1, %s2350_s20 }
   0x5   : > { %s22_s26 = ssub.s32 %s2354_s21, %s2413_s24  ;;  %p32_p0 = scmp.ne.s32.totalorder %s2350_s20, %s2346_s19 }
   0x6   : > { %p23_p1 = scmp.eq.s32.totalorder %s22_s26, 0  ;;  %p33_p2 = scmp.eq.s32.totalorder %s2354_s21, 0 }
   0x7   : > { %p146_p3 = scmp.eq.s32.totalorder %s1922_s22, 1  ;;  %p151_p4 = scmp.ne.s32.totalorder %s2346_s19, %s2342_s18 }
   0x8   : > { %s2426_s27 = scalar_select %p23_p1, %s2350_s20, %s25_s25  }
   0x9   : > { %p34_p5 = por %p33_p2, %p32_p0  ;;  %p2428_p6 = por %p146_p3, %p32_p0 }
   0xa   : > { %p152_p7 = scmp.eq.s32.totalorder %s1923_s23, 1  ;;  %p1925_p9 = scmp.ge.s32.totalorder %s2354_s21, 2 }
   0xc   : > { %p2432_p8 = por %p152_p7, %p151_p4  ;;  %180 = sbr.rel (%p1925_p9) target bundleno = 26 (0x1a), region = 32 }
  0x13   : > { %183 = sbr.rel (!%p34_p5) target bundleno = 26 (0x1a), region = 36  ;;  %s185_s30 = sand.u32 (%p34_p5), 1, %s2350_s20  }
  0x14   : > { %s1927_s6 = sshll.u32 (%p34_p5), %s2354_s21, 2  ;;  %s1926_s7 = sshll.u32 (%p34_p5), %s185_s30, 3 }
  0x15   : > { %s189_s10 = scalar_lea.vmem (%p34_p5), %s3013_s0, %s1927_s6  ;;  %s187_s11 = scalar_lea.vmem (%p34_p5), [#allocation2], %s1926_s7 }
  0x16   : > { %v205_v0 = vld [vmem:[%s189_s10] sm:$0xf] (%p34_p5)  ;;  %v207_v1 = vld [vmem:[%s189_s10 + $0x8] sm:$0xf] (%p34_p5) }
  0x17   : > { %206 = vst [vmem:[%s187_s11] sm:$0xf] (%p34_p5), %v205_v0  ;;  %208 = vst [vmem:[%s187_s11 + $0x4] sm:$0xf] (%p34_p5), %v207_v1 }
  0x1a PF: > { %p1928_p10 = scmp.ge.s32.totalorder %s2354_s21, 1  ;;  %p234_p11 = scmp.lt.s32.totalorder %s2354_s21, 3 }
  0x1c   : > { %p235_p12 = pnand %p1928_p10, %p234_p11 }
  0x1d   : > { %v276_v2 = vld [vmem:[%s3017_s4 + $0x10] sm:$0xff] (!%p235_p12)  ;;  %v274_v3 = vld [vmem:[%s3017_s4] sm:$0xff] (!%p235_p12)  ;;  %s2453_s16 = sand.u32 (!%p235_p12), 1, %s2346_s19   ;;  %v2356_v4 = vmov (!%p235_p12), 0   ;;  %vm314_vm0 = vcmask (!%p235_p12), 130048   ;;  %v277_v5 = vld [vmem:[%s3017_s4 + $0x18] sm:$0xff] (!%p235_p12) }
  0x1e   : > { %238 = sbr.rel (%p235_p12) target bundleno = 2258 (0x8d2), region = 77  ;;  %2190 = vset.pattern.permute.xlu1 (!%p235_p12), %v2356_v4  ;;  %2189 = vset.pattern.permute.xlu0 (!%p235_p12), %v2356_v4  ;;  %s1929_s17 = sshll.u32 (!%p235_p12), %s2453_s16, 3  ;;  %v275_v6 = vld [vmem:[%s3017_s4 + $0x8] sm:$0xff] (!%p235_p12)  ;;  %v2192_v7 = vld [vmem:[%s3014_s1] sm:$0xff] (!%p235_p12)   ;;  %v484_v12 = vld [vmem:[%s3017_s4 + $0x38] sm:$0xff] (!%p235_p12)  ;;  %vm421_vm1 = vcmask (!%p235_p12), 261120  }
  0x1f   : > { %290 = vperm.xlu1 (!%p235_p12), %2190, %v276_v2   ;;  %280 = vperm.xlu0 (!%p235_p12), %2189, %v274_v3   ;;  %s243_s8 = scalar_lea.vmem (!%p235_p12), [#allocation2], %s1929_s17  ;;  %v482_v9 = vld [vmem:[%s3017_s4 + $0x28] sm:$0xff] (!%p235_p12)  ;;  %v481_v10 = vld [vmem:[%s3017_s4 + $0x20] sm:$0xff] (!%p235_p12)  ;;  %v483_v13 = vld [vmem:[%s3017_s4 + $0x30] sm:$0xff] (!%p235_p12)  ;;  %vm2358_vm2 = vmmov (!%p235_p12), 0   ;;  %s1980_s9 = sshll.u32 (!%p235_p12), %s1922_s22, 4 }
  0x20   : > { %v2191_v8 = vld [vmem:[%s243_s8] sm:$0xff] (!%p235_p12)   ;;  %2039 = vmatprep.mubr.msk.bf16.mxu0 (!%p235_p12), %vm314_vm0, %v2192_v7  ;;  %v564_v16 = vld [vmem:[%s3017_s4 + $0x58] sm:$0xff] (!%p235_p12)  ;;  %v563_v17 = vld [vmem:[%s3017_s4 + $0x50] sm:$0xff] (!%p235_p12)  ;;  %s266_s10 = scalar_lea.vmem (!%p235_p12), [#allocation3], %s2453_s16  ;;  %s2969_s14 = scalar_lea.hbm (!%p235_p12), %s3018_s5, %s1980_s9 }
  0x21   : > { %2037 = vmatprep.subr.bf16.mxu0 (!%p235_p12), %v2191_v8  ;;  %v2193_v11 = vld [vmem:[%s3014_s1 + $0x8] sm:$0xff] (!%p235_p12)   ;;  %v561_v15 = vld [vmem:[%s3017_s4 + $0x40] sm:$0xff] (!%p235_p12)  ;;  %v568_v20 = vld [vmem:[%s3017_s4 + $0x78] sm:$0xff] (!%p235_p12)  ;;  %s1862_s11 = sshll.u32 (!%p235_p12), %s266_s10, 4  ;;  %s1850_s22 = scalar_lea.sflag (!%p235_p12), [#allocation4], %s2453_s16  ;;  %s2971_s11 = int_to_ptr.vmem [resolvable:$true] %s1862_s11 }
  0x22   : > { %2038 = vmatpush3.bf16.msra.mxu0 (!%p235_p12), %v2191_v8  ;;  %v562_v14 = vld [vmem:[%s3017_s4 + $0x48] sm:$0xff] (!%p235_p12)  ;;  %v565_v19 = vld [vmem:[%s3017_s4 + $0x60] sm:$0xff] (!%p235_p12)  ;;  %v567_v21 = vld [vmem:[%s3017_s4 + $0x70] sm:$0xff] (!%p235_p12)  ;;  %s2292_s15 = scalar_lea.vmem (!%p235_p12), %s2971_s11, 16  ;;  %s2359_s17 = smov (!%p235_p12), [#allocation3]  }
  0x23   : > { %295 = vperm.xlu1 (!%p235_p12), %2190, %v277_v5   ;;  %285 = vperm.xlu0 (!%p235_p12), %2189, %v275_v6   ;;  %v566_v18 = vld [vmem:[%s3017_s4 + $0x68] sm:$0xff] (!%p235_p12)  ;;  %v569_v23 = vld [vmem:[%s3017_s4 + $0x80] sm:$0xff] (!%p235_p12)  ;;  %v572_v24 = vld [vmem:[%s3017_s4 + $0x98] sm:$0xff] (!%p235_p12)  ;;  %p2293_p13 = scmp.ne.s32.totalorder (!%p235_p12), %s2971_s11, %s2292_s15  ;;  %s2296_s23 = sshll.u32 (!%p235_p12), %s2359_s17, 4  ;;  %s2297_s23 = int_to_ptr.vmem [resolvable:$false] %s2296_s23 }
  0x24   : > { %v570_v22 = vld [vmem:[%s3017_s4 + $0x88] sm:$0xff] (!%p235_p12)  ;;  %v571_v25 = vld [vmem:[%s3017_s4 + $0x90] sm:$0xff] (!%p235_p12)  ;;  %v573_v27 = vld [vmem:[%s3017_s4 + $0xa0] sm:$0xff] (!%p235_p12)  ;;  %s2298_s25 = scalar_lea.vmem (!%p235_p12), %s2297_s23, 32  ;;  %p2299_p2 = scmp.lt.s32.totalorder (!%p235_p12), %s2971_s11, %s2297_s23 }
  0x25   : > { %2040 = vmatmul.mubr.msk.bf16.vlgmr.msra.gmra.mrb[0].mxu0 %vm314_vm0, %v2193_v11  ;;  %v574_v26 = vld [vmem:[%s3017_s4 + $0xa8] sm:$0xff]  ;;  %v576_v28 = vld [vmem:[%s3017_s4 + $0xb8] sm:$0xff]  ;;  %v575_v29 = vld [vmem:[%s3017_s4 + $0xb0] sm:$0xff]  ;;  %p2294_p0 = pnand %p2293_p13, %p2428_p6  ;;  %p2300_p3 = scmp.lt.s32.totalorder %s2298_s25, %s2292_s15 }
  0x26   : > { %v1040_v30 = vld [vmem:[%s3017_s4 + $0xc8] sm:$0xff]  ;;  %v1039_v31 = vld [vmem:[%s3017_s4 + $0xc0] sm:$0xff]  ;;  %v1042_v32 = vld [vmem:[%s3017_s4 + $0xd8] sm:$0xff] }
  0x27   : > { %492 = vperm.xlu1 %2190, %v482_v9   ;;  %487 = vperm.xlu0 %2189, %v481_v10   ;;  %v1041_v33 = vld [vmem:[%s3017_s4 + $0xd0] sm:$0xff]  ;;  %v1177_v34 = vld [vmem:[%s3017_s4 + $0xe8] sm:$0xff]  ;;  %v1176_v35 = vld [vmem:[%s3017_s4 + $0xe0] sm:$0xff]  ;;  %p2295_p1 = pneg %p2294_p0  ;;  %p2301_p4 = por %p2300_p3, %p2299_p2 }
  0x28   : > { %v1179_v36 = vld [vmem:[%s3017_s4 + $0xf8] sm:$0xff]  ;;  %v1178_v37 = vld [vmem:[%s3017_s4 + $0xf0] sm:$0xff]  ;;  %v1257_v38 = vld [vmem:[%s3017_s4 + $0x108] sm:$0xff] }
  0x29   : > { %v1256_v39 = vld [vmem:[%s3017_s4 + $0x100] sm:$0xff]  ;;  %v1259_v40 = vld [vmem:[%s3017_s4 + $0x118] sm:$0xff]  ;;  %v1258_v41 = vld [vmem:[%s3017_s4 + $0x110] sm:$0xff]  ;;  %p2302_p5 = pnand %p2301_p4, %p2295_p1 }
  0x2a   : > { %v1261_v42 = vld [vmem:[%s3017_s4 + $0x128] sm:$0xff]  ;;  %v1260_v43 = vld [vmem:[%s3017_s4 + $0x120] sm:$0xff]  ;;  %v1263_v44 = vld [vmem:[%s3017_s4 + $0x138] sm:$0xff] }
  0x2b   : > { %502 = vperm.xlu1 %2190, %v484_v12   ;;  %497 = vperm.xlu0 %2189, %v483_v13   ;;  %v1262_v45 = vld [vmem:[%s3017_s4 + $0x130] sm:$0xff]  ;;  %v1265_v46 = vld [vmem:[%s3017_s4 + $0x148] sm:$0xff]  ;;  %v1264_v47 = vld [vmem:[%s3017_s4 + $0x140] sm:$0xff] }
  0x2c   : > { %v1267_v48 = vld [vmem:[%s3017_s4 + $0x158] sm:$0xff]  ;;  %v1266_v49 = vld [vmem:[%s3017_s4 + $0x150] sm:$0xff]  ;;  %v1269_v50 = vld [vmem:[%s3017_s4 + $0x168] sm:$0xff] }
  0x2d   : > { %v1268_v51 = vld [vmem:[%s3017_s4 + $0x160] sm:$0xff]  ;;  %v1271_v52 = vld [vmem:[%s3017_s4 + $0x178] sm:$0xff]  ;;  %v1270_v53 = vld [vmem:[%s3017_s4 + $0x170] sm:$0xff] }
  0x2e   : > { %v1735_v54 = vld [vmem:[%s3017_s4 + $0x188] sm:$0xff]  ;;  %v1734_v55 = vld [vmem:[%s3017_s4 + $0x180] sm:$0xff]  ;;  %v1737_v56 = vld [vmem:[%s3017_s4 + $0x198] sm:$0xff] }
  0x2f   : > { %584 = vperm.xlu1 %2190, %v562_v14   ;;  %579 = vperm.xlu0 %2189, %v561_v15   ;;  %v1736_v57 = vld [vmem:[%s3017_s4 + $0x190] sm:$0xff]  ;;  %v1799_v58 = vld [vmem:[%s3017_s4 + $0x1a0] sm:$0x1] }
  0x30   : > { %v2194_v59 = vld [vmem:[%s3015_s2] sm:$0xff]  }
  0x31   : > { %2047 = vmatprep.mubr.msk.bf16.mxu1 %vm421_vm1, %v2194_v59 }
  0x33   : > { %594 = vperm.xlu1 %2190, %v564_v16   ;;  %589 = vperm.xlu0 %2189, %v563_v17  }
  0x37   : > { %604 = vperm.xlu1 %2190, %v566_v18   ;;  %599 = vperm.xlu0 %2189, %v565_v19  }
  0x3b   : > { %614 = vperm.xlu1 %2190, %v568_v20   ;;  %609 = vperm.xlu0 %2189, %v567_v21  }
  0x3f   : > { %624 = vperm.xlu1 %2190, %v570_v22   ;;  %619 = vperm.xlu0 %2189, %v569_v23  }
  0x43   : > { %634 = vperm.xlu1 %2190, %v572_v24   ;;  %629 = vperm.xlu0 %2189, %v571_v25  }
  0x47   : > { %644 = vperm.xlu1 %2190, %v574_v26   ;;  %639 = vperm.xlu0 %2189, %v573_v27  }
  0x4b   : > { %654 = vperm.xlu1 %2190, %v576_v28   ;;  %649 = vperm.xlu0 %2189, %v575_v29  }
  0x4f   : > { %1050 = vperm.xlu1 %2190, %v1040_v30   ;;  %1045 = vperm.xlu0 %2189, %v1039_v31  }
  0x53   : > { %1060 = vperm.xlu1 %2190, %v1042_v32   ;;  %1055 = vperm.xlu0 %2189, %v1041_v33  }
  0x57   : > { %1187 = vperm.xlu1 %2190, %v1177_v34   ;;  %1182 = vperm.xlu0 %2189, %v1176_v35  }
  0x5b   : > { %1197 = vperm.xlu1 %2190, %v1179_v36   ;;  %1192 = vperm.xlu0 %2189, %v1178_v37  }
  0x5f   : > { %1279 = vperm.xlu1 %2190, %v1257_v38   ;;  %1274 = vperm.xlu0 %2189, %v1256_v39  }
  0x63   : > { %1289 = vperm.xlu1 %2190, %v1259_v40   ;;  %1284 = vperm.xlu0 %2189, %v1258_v41  }
  0x67   : > { %1299 = vperm.xlu1 %2190, %v1261_v42   ;;  %1294 = vperm.xlu0 %2189, %v1260_v43  }
  0x6b   : > { %1309 = vperm.xlu1 %2190, %v1263_v44   ;;  %1304 = vperm.xlu0 %2189, %v1262_v45   ;;  %v2195_v44 = vld [vmem:[%s3015_s2 + $0x8] sm:$0xff]   ;;  %v2196_v45 = vld [vmem:[%s3015_s2 + $0x10] sm:$0xff]  }
  0x6c   : > { %2055 = vmatprep.mubr.msk.bf16.mxu0 %vm421_vm1, %v2196_v45 }
  0x6f   : > { %1319 = vperm.xlu1 %2190, %v1265_v46   ;;  %1314 = vperm.xlu0 %2189, %v1264_v47  }
  0x73   : > { %1329 = vperm.xlu1 %2190, %v1267_v48   ;;  %1324 = vperm.xlu0 %2189, %v1266_v49  }
  0x77   : > { %1339 = vperm.xlu1 %2190, %v1269_v50   ;;  %1334 = vperm.xlu0 %2189, %v1268_v51  }
  0x7b   : > { %1349 = vperm.xlu1 %2190, %v1271_v52   ;;  %1344 = vperm.xlu0 %2189, %v1270_v53  }
  0x7f   : > { %1745 = vperm.xlu1 %2190, %v1735_v54   ;;  %1740 = vperm.xlu0 %2189, %v1734_v55  }
  0x83   : > { %1755 = vperm.xlu1 %2190, %v1737_v56   ;;  %1750 = vperm.xlu0 %2189, %v1736_v57  }
  0x87   : > { %1802 = vperm.xlu0 %2189, %v1799_v58  }
  0x9e   : > { %v281_v60 = vpop.permute.xlu0 %280  ;;  %v291_v62 = vpop.permute.xlu1 %290 }
  0xa2   : > { %v286_v1 = vpop.permute.xlu0 %285  ;;  %v296_v7 = vpop.permute.xlu1 %295 }
  0xa6   : > { %v488_v47 = vpop.permute.xlu0 %487  ;;  %v493_v51 = vpop.permute.xlu1 %492 }
  0xaa   : > { %v498_v58 = vpop.permute.xlu0 %497 }
  0xf8   : > { %v2041_v61 = vpop.f32.mrb[0].mxu0 }
  0xf9   : > { %v355_v63 = vpop.f32.mrb[1].mxu0  ;;  %v364_v5 = vadd.f32 %v2041_v61, %v291_v62  ;;  %v503_v61 = vpop.permute.xlu1 %502 }
  0xfa   : > { %v2042_v0 = vpop.f32.mrb[2].mxu0  ;;  %v356_v3 = vadd.f32 %v355_v63, %v281_v60 }
  0xfb   : > { %v358_v2 = vpop.f32.mrb[3].mxu0  ;;  %v367_v8 = vadd.f32 %v2042_v0, %v296_v7 }
  0xfc   : > { %v359_v4 = vadd.f32 %v358_v2, %v286_v1 }
  0xfe   : > { %v370_v6 = vadd.f32 %v359_v4, %v356_v3 }
 0x100   : > { %v371_v9 = vadd.f32 %v370_v6, %v364_v5 }
 0x102   : > { %v372_v10 = vadd.f32 %v371_v9, %v367_v8 }
 0x104   : > { %v373_v11 = vrot.slane %v372_v10, 4 }
 0x106   : > { %v374_v12 = vadd.f32 %v373_v11, %v372_v10 }
 0x108   : > { %v375_v13 = vrot.slane %v374_v12, 2 }
 0x10a   : > { %v376_v14 = vadd.f32 %v375_v13, %v374_v12 }
 0x10c   : > { %v377_v15 = vrot.slane %v376_v14, 1 }
 0x10e   : > { %v378_v16 = vadd.f32 %v377_v15, %v376_v14 }
 0x110   : > { %v380_v17 = vmul.f32 0.03125, %v378_v16 }
 0x112   : > { %v382_v18 = vsub.f32 %v359_v4, %v380_v17  ;;  %v381_v19 = vsub.f32 %v356_v3, %v380_v17  ;;  %v383_v20 = vsub.f32 %v364_v5, %v380_v17  ;;  %v384_v22 = vsub.f32 %v367_v8, %v380_v17 }
 0x114   : > { %v386_v21 = vmul.f32 %v382_v18, %v382_v18  ;;  %v385_v23 = vmul.f32 %v381_v19, %v381_v19  ;;  %v387_v24 = vmul.f32 %v383_v20, %v383_v20  ;;  %v388_v26 = vmul.f32 %v384_v22, %v384_v22 }
 0x116   : > { %v389_v25 = vadd.f32 %v386_v21, %v385_v23 }
 0x118   : > { %v390_v27 = vadd.f32 %v389_v25, %v387_v24 }
 0x11a   : > { %v391_v28 = vadd.f32 %v390_v27, %v388_v26 }
 0x11c   : > { %v392_v29 = vrot.slane %v391_v28, 4 }
 0x11e   : > { %v393_v30 = vadd.f32 %v392_v29, %v391_v28 }
 0x120   : > { %v394_v31 = vrot.slane %v393_v30, 2 }
 0x122   : > { %v395_v32 = vadd.f32 %v394_v31, %v393_v30 }
 0x124   : > { %v396_v33 = vrot.slane %v395_v32, 1 }
 0x126   : > { %v397_v34 = vadd.f32 %v396_v33, %v395_v32 }
 0x128   : > { %v398_v35 = vmul.f32 0.03125, %v397_v34  ;;  %v2197_v34 = vld [vmem:[%s3015_s2 + $0x18] sm:$0xff]  }
 0x12a   : > { %v399_v36 = vadd.f32 1e-05, %v398_v35  ;;  %v2198_v35 = vld [vmem:[%s3015_s2 + $0x20] sm:$0xff]  }
 0x12c   : > { %2218 = vrsqrt.f32 %v399_v36  ;;  %v2199_v36 = vld [vmem:[%s3015_s2 + $0x28] sm:$0xff]  }
 0x136   : > { %v2219_v37 = vpop.eup %2218 }
 0x137   : > { %v401_v38 = vmul.f32 %v2219_v37, %v381_v19  ;;  %v402_v39 = vmul.f32 %v2219_v37, %v382_v18  ;;  %v403_v40 = vmul.f32 %v2219_v37, %v383_v20  ;;  %v404_v41 = vmul.f32 %v2219_v37, %v384_v22  ;;  %v2200_v37 = vld [vmem:[%s3015_s2 + $0x30] sm:$0xff]  }
 0x139   : > { %v405_v42 = vpack.c.bf16 %v402_v39, %v401_v38  ;;  %v406_v43 = vpack.c.bf16 %v404_v41, %v403_v40  ;;  %v2201_v38 = vld [vmem:[%s3015_s2 + $0x38] sm:$0xff]   ;;  %v2202_v39 = vld [vmem:[%s3015_s2 + $0x40] sm:$0xff]   ;;  %v2203_v40 = vld [vmem:[%s3015_s2 + $0x48] sm:$0xff]  }
 0x13a   : > { %v2204_v41 = vld [vmem:[%s3016_s3] sm:$0xff]  }
 0x13b   : > { %2043 = vmatprep.subr.bf16.mxu1 %v405_v42 }
 0x13c   : > { %2044 = vmatpush3.bf16.msra.mxu1 %v405_v42  ;;  %v580_v42 = vpop.permute.xlu0 %579 }
 0x13d   : > { %2045 = vmatprep.subr.bf16.mxu1 %v406_v43 }
 0x140   : > { %2046 = vmatpush3.bf16.msra.mxu1 %v406_v43  ;;  %v585_v43 = vpop.permute.xlu1 %584 }
 0x143   : > { %2048 = vmatmul.mubr.msk.bf16.vlgmr.msra.gmra.mrb[0].mxu1 %vm421_vm1, %v2195_v44  ;;  %v590_v44 = vpop.permute.xlu0 %589 }
 0x144   : > { %2087 = vmatprep.mubr.bf16.mxu1 %v2204_v41  ;;  %v595_v45 = vpop.permute.xlu1 %594 }
 0x216   : > { %v2049_v46 = vpop.f32.mrb[0].mxu1 }
 0x217   : > { %v462_v48 = vpop.f32.mrb[1].mxu1  ;;  %v479_v53 = vadd.f32 %v2049_v46, %v364_v5  ;;  %v600_v46 = vpop.permute.xlu0 %599 }
 0x218   : > { %v477_v49 = vadd.f32 %v462_v48, %v356_v3  ;;  %v2050_v50 = vpop.f32.mrb[2].mxu1 }
 0x219   : > { %v465_v52 = vpop.f32.mrb[3].mxu1  ;;  %v480_v56 = vadd.f32 %v2050_v50, %v367_v8  ;;  %v2633_v59 = vadd.f32 %v498_v58, %v479_v53 }
 0x21a   : > { %v478_v54 = vadd.f32 %v465_v52, %v359_v4  ;;  %v2629_v55 = vadd.f32 %v488_v47, %v477_v49  ;;  %v605_v47 = vpop.permute.xlu1 %604 }
 0x21b   : > { %v2637_v62 = vadd.f32 %v503_v61, %v480_v56  ;;  %v610_v48 = vpop.permute.xlu0 %609 }
 0x21c   : > { %v2631_v57 = vadd.f32 %v493_v51, %v478_v54 }
 0x21e   : > { %v509_v60 = vadd.f32 %v2631_v57, %v2629_v55  ;;  %v615_v52 = vpop.permute.xlu1 %614 }
 0x220   : > { %v510_v63 = vadd.f32 %v509_v60, %v2633_v59 }
 0x222   : > { %v511_v0 = vadd.f32 %v510_v63, %v2637_v62 }
 0x224   : > { %v512_v1 = vrot.slane %v511_v0, 4 }
 0x226   : > { %v513_v2 = vadd.f32 %v512_v1, %v511_v0 }
 0x228   : > { %v514_v3 = vrot.slane %v513_v2, 2 }
 0x22a   : > { %v515_v4 = vadd.f32 %v514_v3, %v513_v2  ;;  %v620_v2 = vpop.permute.xlu0 %619 }
 0x22c   : > { %v516_v5 = vrot.slane %v515_v4, 1 }
 0x22e   : > { %v517_v6 = vadd.f32 %v516_v5, %v515_v4 }
 0x230   : > { %v518_v7 = vmul.f32 0.03125, %v517_v6 }
 0x232   : > { %v520_v8 = vsub.f32 %v2631_v57, %v518_v7  ;;  %v519_v9 = vsub.f32 %v2629_v55, %v518_v7  ;;  %v521_v10 = vsub.f32 %v2633_v59, %v518_v7  ;;  %v522_v12 = vsub.f32 %v2637_v62, %v518_v7  ;;  %v625_v7 = vpop.permute.xlu1 %624 }
 0x234   : > { %v524_v11 = vmul.f32 %v520_v8, %v520_v8  ;;  %v523_v13 = vmul.f32 %v519_v9, %v519_v9  ;;  %v525_v14 = vmul.f32 %v521_v10, %v521_v10  ;;  %v526_v16 = vmul.f32 %v522_v12, %v522_v12 }
 0x236   : > { %v527_v15 = vadd.f32 %v524_v11, %v523_v13 }
 0x238   : > { %v528_v17 = vadd.f32 %v527_v15, %v525_v14 }
 0x23a   : > { %v529_v18 = vadd.f32 %v528_v17, %v526_v16 }
 0x23c   : > { %v530_v19 = vrot.slane %v529_v18, 4 }
 0x23e   : > { %v531_v20 = vadd.f32 %v530_v19, %v529_v18 }
 0x240   : > { %v532_v21 = vrot.slane %v531_v20, 2 }
 0x242   : > { %v533_v22 = vadd.f32 %v532_v21, %v531_v20 }
 0x244   : > { %v534_v23 = vrot.slane %v533_v22, 1 }
 0x246   : > { %v535_v24 = vadd.f32 %v534_v23, %v533_v22 }
 0x248   : > { %v536_v25 = vmul.f32 0.03125, %v535_v24  ;;  %v630_v24 = vpop.permute.xlu0 %629 }
 0x24a   : > { %v537_v26 = vadd.f32 1e-05, %v536_v25 }
 0x24c   : > { %2220 = vrsqrt.f32 %v537_v26 }
 0x256   : > { %v2221_v27 = vpop.eup %2220 }
 0x257   : > { %v539_v28 = vmul.f32 %v2221_v27, %v519_v9  ;;  %v540_v29 = vmul.f32 %v2221_v27, %v520_v8  ;;  %v541_v30 = vmul.f32 %v2221_v27, %v521_v10  ;;  %v542_v31 = vmul.f32 %v2221_v27, %v522_v12 }
 0x259   : > { %v543_v32 = vpack.c.bf16 %v540_v29, %v539_v28  ;;  %v544_v33 = vpack.c.bf16 %v542_v31, %v541_v30 }
 0x25b   : > { %2051 = vmatprep.subr.bf16.mxu0 %v543_v32 }
 0x25c   : > { %2052 = vmatpush3.bf16.msra.mxu0 %v543_v32  ;;  %v635_v32 = vpop.permute.xlu1 %634 }
 0x25d   : > { %2053 = vmatprep.subr.bf16.mxu0 %v544_v33 }
 0x260   : > { %2054 = vmatpush3.bf16.msra.mxu0 %v544_v33 }
 0x263   : > { %2056 = vmatmul.mubr.msk.bf16.vlgmr.msra.gmra.mrb[4].mxu0 %vm421_vm1, %v2197_v34 }
 0x264   : > { %2059 = vmatprep.mubr.msk.bf16.mxu0 %vm421_vm1, %v2198_v35 }
 0x26b   : > { %2060 = vmatmul.mubr.msk.bf16.gmra.mrb[8].mxu0 %vm421_vm1, %v2199_v36 }
 0x26c   : > { %2063 = vmatprep.mubr.msk.bf16.mxu0 %vm421_vm1, %v2200_v37 }
 0x273   : > { %2064 = vmatmul.mubr.msk.bf16.gmra.mrb[12].mxu0 %vm421_vm1, %v2201_v38 }
 0x274   : > { %2067 = vmatprep.mubr.msk.bf16.mxu0 %vm421_vm1, %v2202_v39 }
 0x27b   : > { %2068 = vmatmul.mubr.msk.bf16.gmra.mrb[16].mxu0 %vm421_vm1, %v2203_v40 }
 0x336   : > { %v2057_v49 = vpop.f32.mrb[4].mxu0 }
 0x337   : > { %v764_v50 = vadd.f32 %v2057_v49, %v590_v44  ;;  %v755_v51 = vpop.f32.mrb[5].mxu0 }
 0x338   : > { %v2676_v53 = vadd.f32 %v755_v51, %v580_v42  ;;  %v2058_v54 = vpop.f32.mrb[6].mxu0 }
 0x339   : > { %v836_v56 = vmul.f32 0.044715, %v764_v50  ;;  %v2678_v58 = vadd.f32 %v2058_v54, %v595_v45  ;;  %v758_v60 = vpop.f32.mrb[7].mxu0  ;;  %v820_v44 = vmul.f32 0.5, %v764_v50  ;;  %v640_v45 = vpop.permute.xlu0 %639 }
 0x33a   : > { %v834_v61 = vmul.f32 0.044715, %v2676_v53  ;;  %v2681_v63 = vadd.f32 %v758_v60, %v585_v43  ;;  %v818_v60 = vmul.f32 0.5, %v2676_v53 }
 0x33b   : > { %v852_v0 = vmul.f32 %v836_v56, %v764_v50  ;;  %v837_v1 = vmul.f32 0.044715, %v2678_v58 }
 0x33c   : > { %v850_v3 = vmul.f32 %v834_v61, %v2676_v53  ;;  %v835_v4 = vmul.f32 0.044715, %v2681_v63 }
 0x33d   : > { %v868_v5 = vmul.f32 %v852_v0, %v764_v50  ;;  %v853_v6 = vmul.f32 %v837_v1, %v2678_v58 }
 0x33e   : > { %v866_v8 = vmul.f32 %v850_v3, %v2676_v53  ;;  %v851_v9 = vmul.f32 %v835_v4, %v2681_v63  ;;  %v2061_v10 = vpop.f32.mrb[8].mxu0 }
 0x33f   : > { %v869_v11 = vmul.f32 %v853_v6, %v2678_v58  ;;  %v2690_v12 = vadd.f32 %v2061_v10, %v610_v48  ;;  %v771_v13 = vpop.f32.mrb[9].mxu0  ;;  %v884_v14 = vadd.f32 %v868_v5, %v764_v50  ;;  %v645_v50 = vpop.permute.xlu1 %644 }
 0x340   : > { %v867_v15 = vmul.f32 %v851_v9, %v2681_v63  ;;  %v2693_v16 = vadd.f32 %v771_v13, %v600_v46  ;;  %v2062_v17 = vpop.f32.mrb[10].mxu0  ;;  %v882_v18 = vadd.f32 %v866_v8, %v2676_v53 }
 0x341   : > { %v840_v19 = vmul.f32 0.044715, %v2690_v12  ;;  %v2697_v20 = vadd.f32 %v2062_v17, %v615_v52  ;;  %v774_v21 = vpop.f32.mrb[11].mxu0  ;;  %v885_v22 = vadd.f32 %v869_v11, %v2678_v58  ;;  %v900_v23 = vmul.f32 0.7978846, %v884_v14  ;;  %v650_v17 = vpop.permute.xlu0 %649 }
 0x342   : > { %v838_v25 = vmul.f32 0.044715, %v2693_v16  ;;  %v2701_v26 = vadd.f32 %v774_v21, %v605_v47  ;;  %v883_v27 = vadd.f32 %v867_v15, %v2681_v63  ;;  %v898_v28 = vmul.f32 0.7978846, %v882_v18 }
 0x343   : > { %v856_v29 = vmul.f32 %v840_v19, %v2690_v12  ;;  %v841_v30 = vmul.f32 0.044715, %v2697_v20  ;;  %v901_v31 = vmul.f32 0.7978846, %v885_v22  ;;  %2222 = vtanh.f32 %v900_v23 }
 0x344   : > { %v854_v33 = vmul.f32 %v838_v25, %v2693_v16  ;;  %v839_v34 = vmul.f32 0.044715, %v2701_v26  ;;  %v899_v35 = vmul.f32 0.7978846, %v883_v27  ;;  %2224 = vtanh.f32 %v898_v28 }
 0x345   : > { %v872_v36 = vmul.f32 %v856_v29, %v2690_v12  ;;  %v857_v37 = vmul.f32 %v841_v30, %v2697_v20  ;;  %2226 = vtanh.f32 %v901_v31  ;;  %v821_v14 = vmul.f32 0.5, %v2678_v58  ;;  %v655_v58 = vpop.permute.xlu1 %654 }
 0x346   : > { %v870_v38 = vmul.f32 %v854_v33, %v2693_v16  ;;  %v855_v39 = vmul.f32 %v839_v34, %v2701_v26  ;;  %v2065_v40 = vpop.f32.mrb[12].mxu0  ;;  %2228 = vtanh.f32 %v899_v35  ;;  %v822_v22 = vmul.f32 0.5, %v2693_v16 }
 0x347   : > { %v873_v41 = vmul.f32 %v857_v37, %v2697_v20  ;;  %v2713_v42 = vadd.f32 %v2065_v40, %v630_v24  ;;  %v787_v43 = vpop.f32.mrb[13].mxu0  ;;  %v888_v51 = vadd.f32 %v872_v36, %v2690_v12 }
 0x348   : > { %v871_v46 = vmul.f32 %v855_v39, %v2701_v26  ;;  %v2716_v47 = vadd.f32 %v787_v43, %v620_v2  ;;  %v2066_v48 = vpop.f32.mrb[14].mxu0  ;;  %v886_v49 = vadd.f32 %v870_v38, %v2693_v16 }
 0x349   : > { %v844_v52 = vmul.f32 0.044715, %v2713_v42  ;;  %v2721_v54 = vadd.f32 %v2066_v48, %v635_v32  ;;  %v790_v56 = vpop.f32.mrb[15].mxu0  ;;  %v889_v61 = vadd.f32 %v873_v41, %v2697_v20  ;;  %v904_v6 = vmul.f32 0.7978846, %v888_v51 }
 0x34a   : > { %v842_v0 = vmul.f32 0.044715, %v2716_v47  ;;  %v2726_v1 = vadd.f32 %v790_v56, %v625_v7  ;;  %v887_v2 = vadd.f32 %v871_v46, %v2701_v26  ;;  %v902_v3 = vmul.f32 0.7978846, %v886_v49 }
 0x34b   : > { %v860_v4 = vmul.f32 %v844_v52, %v2713_v42  ;;  %v845_v5 = vmul.f32 0.044715, %v2721_v54  ;;  %v905_v8 = vmul.f32 0.7978846, %v889_v61  ;;  %v819_v7 = vmul.f32 0.5, %v2681_v63 }
 0x34c   : > { %v858_v9 = vmul.f32 %v842_v0, %v2716_v47  ;;  %v843_v53 = vmul.f32 0.044715, %v2726_v1  ;;  %v903_v10 = vmul.f32 0.7978846, %v887_v2  ;;  %2230 = vtanh.f32 %v902_v3 }
 0x34d   : > { %v2223_v11 = vpop.eup %2222  ;;  %v861_v13 = vmul.f32 %v845_v5, %v2721_v54  ;;  %2232 = vtanh.f32 %v904_v6  ;;  %v876_v29 = vmul.f32 %v860_v4, %v2713_v42  ;;  %v824_v4 = vmul.f32 0.5, %v2690_v12 }
 0x34e   : > { %v2225_v15 = vpop.eup %2224  ;;  %v859_v18 = vmul.f32 %v843_v53, %v2726_v1  ;;  %v2069_v19 = vpop.f32.mrb[16].mxu0  ;;  %v932_v21 = vadd.f32 1.0, %v2223_v11  ;;  %2234 = vtanh.f32 %v903_v10  ;;  %v874_v24 = vmul.f32 %v858_v9, %v2716_v47 }
 0x34f   : > { %v2227_v23 = vpop.eup %2226  ;;  %v2739_v25 = vadd.f32 %v2069_v19, %v650_v17  ;;  %v803_v27 = vpop.f32.mrb[17].mxu0  ;;  %v930_v28 = vadd.f32 1.0, %v2225_v15  ;;  %2236 = vtanh.f32 %v905_v8  ;;  %v877_v16 = vmul.f32 %v861_v13, %v2721_v54 }
 0x350   : > { %v2229_v63 = vpop.eup %2228  ;;  %v875_v30 = vmul.f32 %v859_v18, %v2726_v1  ;;  %v2743_v31 = vadd.f32 %v803_v27, %v640_v45  ;;  %v2070_v32 = vpop.f32.mrb[18].mxu0  ;;  %v933_v33 = vadd.f32 1.0, %v2227_v23  ;;  %v948_v40 = vmul.f32 %v932_v21, %v820_v44 }
 0x351   : > { %v848_v34 = vmul.f32 0.044715, %v2739_v25  ;;  %v2747_v35 = vadd.f32 %v2070_v32, %v655_v58  ;;  %v806_v36 = vpop.f32.mrb[19].mxu0  ;;  %v931_v37 = vadd.f32 1.0, %v2229_v63  ;;  %v946_v45 = vmul.f32 %v930_v28, %v818_v60 }
 0x352   : > { %v846_v38 = vmul.f32 0.044715, %v2743_v31  ;;  %v2750_v39 = vadd.f32 %v806_v36, %v645_v50  ;;  %v949_v41 = vmul.f32 %v933_v33, %v821_v14  ;;  %v890_v48 = vadd.f32 %v874_v24, %v2716_v47 }
 0x353   : > { %v849_v43 = vmul.f32 0.044715, %v2747_v35  ;;  %v947_v46 = vmul.f32 %v931_v37, %v819_v7  ;;  %v891_v56 = vadd.f32 %v875_v30, %v2726_v1  ;;  %v864_v61 = vmul.f32 %v848_v34, %v2739_v25 }
 0x354   : > { %v862_v49 = vmul.f32 %v846_v38, %v2743_v31  ;;  %v847_v51 = vmul.f32 0.044715, %v2750_v39  ;;  %v967_v52 = vpack.c.bf16 %v949_v41, %v948_v40  ;;  %v823_v50 = vmul.f32 0.5, %v2701_v26 }
 0x355   : > { %v966_v0 = vpack.c.bf16 %v947_v46, %v946_v45  ;;  %v906_v44 = vmul.f32 0.7978846, %v890_v48  ;;  %v865_v3 = vmul.f32 %v849_v43, %v2747_v35  ;;  %v907_v5 = vmul.f32 0.7978846, %v891_v56 }
 0x356   : > { %v2231_v2 = vpop.eup %2230  ;;  %v863_v60 = vmul.f32 %v847_v51, %v2750_v39  ;;  %v878_v8 = vmul.f32 %v862_v49, %v2743_v31  ;;  %v892_v53 = vadd.f32 %v876_v29, %v2713_v42  ;;  %v893_v13 = vadd.f32 %v877_v16, %v2721_v54 }
 0x357   : > { %v2233_v6 = vpop.eup %2232  ;;  %2071 = vmatprep.subr.bf16.mxu1 %v966_v0  ;;  %v934_v9 = vadd.f32 1.0, %v2231_v2  ;;  %2238 = vtanh.f32 %v906_v44  ;;  %v880_v12 = vmul.f32 %v864_v61, %v2739_v25  ;;  %v825_v15 = vmul.f32 0.5, %v2697_v20 }
 0x358   : > { %v2235_v10 = vpop.eup %2234  ;;  %v879_v26 = vmul.f32 %v863_v60, %v2750_v39  ;;  %2072 = vmatpush3.bf16.msra.mxu1 %v966_v0  ;;  %v936_v11 = vadd.f32 1.0, %v2233_v6  ;;  %2240 = vtanh.f32 %v907_v5  ;;  %v908_v17 = vmul.f32 0.7978846, %v892_v53 }
 0x359   : > { %v2237_v7 = vpop.eup %2236  ;;  %2073 = vmatprep.subr.bf16.mxu1 %v967_v52  ;;  %v935_v14 = vadd.f32 1.0, %v2235_v10  ;;  %v881_v18 = vmul.f32 %v865_v3, %v2747_v35  ;;  %v950_v19 = vmul.f32 %v934_v9, %v822_v22  ;;  %v909_v23 = vmul.f32 0.7978846, %v893_v13 }
 0x35a   : > { %v937_v21 = vadd.f32 1.0, %v2237_v7  ;;  %2242 = vtanh.f32 %v908_v17  ;;  %v894_v27 = vadd.f32 %v878_v8, %v2743_v31  ;;  %v895_v28 = vadd.f32 %v879_v26, %v2750_v39 }
 0x35b   : > { %v951_v24 = vmul.f32 %v935_v14, %v823_v50  ;;  %v952_v63 = vmul.f32 %v936_v11, %v824_v4  ;;  %2244 = vtanh.f32 %v909_v23  ;;  %v896_v20 = vadd.f32 %v880_v12, %v2739_v25 }
 0x35c   : > { %2074 = vmatpush3.bf16.msra.mxu1 %v967_v52  ;;  %v953_v58 = vmul.f32 %v937_v21, %v825_v15  ;;  %v910_v30 = vmul.f32 0.7978846, %v894_v27  ;;  %v911_v32 = vmul.f32 0.7978846, %v895_v28  ;;  %v897_v22 = vadd.f32 %v881_v18, %v2747_v35  ;;  %v1051_v18 = vpop.permute.xlu1 %1050 }
 0x35d   : > { %v968_v29 = vpack.c.bf16 %v951_v24, %v950_v19  ;;  %v912_v16 = vmul.f32 0.7978846, %v896_v20  ;;  %v826_v40 = vmul.f32 0.5, %v2716_v47  ;;  %v827_v41 = vmul.f32 0.5, %v2726_v1 }
 0x35e   : > { %v969_v33 = vpack.c.bf16 %v953_v58, %v952_v63  ;;  %2246 = vtanh.f32 %v910_v30  ;;  %v913_v34 = vmul.f32 0.7978846, %v897_v22  ;;  %v828_v56 = vmul.f32 0.5, %v2713_v42 }
 0x35f   : > { %2075 = vmatprep.subr.bf16.mxu1 %v968_v29  ;;  %2248 = vtanh.f32 %v911_v32  ;;  %v829_v61 = vmul.f32 0.5, %v2721_v54  ;;  %v830_v4 = vmul.f32 0.5, %v2743_v31  ;;  %v831_v5 = vmul.f32 0.5, %v2750_v39  ;;  %v2205_v31 = vld [vmem:[%s3016_s3 + $0x8] sm:$0xff]   ;;  %v1046_v39 = vpop.permute.xlu0 %1045 }
 0x360   : > { %2076 = vmatpush3.bf16.msra.mxu1 %v968_v29  ;;  %2250 = vtanh.f32 %v912_v16  ;;  %v832_v42 = vmul.f32 0.5, %v2739_v25  ;;  %v833_v10 = vmul.f32 0.5, %v2747_v35  ;;  %v2206_v25 = vld [vmem:[%s3015_s2 + $0x50] sm:$0xff]   ;;  %v1061_v30 = vpop.permute.xlu1 %1060 }
 0x361   : > { %v2239_v36 = vpop.eup %2238  ;;  %2077 = vmatprep.subr.bf16.mxu1 %v969_v33  ;;  %2252 = vtanh.f32 %v913_v34  ;;  %2095 = vmatprep.mubr.msk.bf16.mxu0 %vm421_vm1, %v2206_v25 }
 0x362   : > { %v2241_v37 = vpop.eup %2240  ;;  %v938_v38 = vadd.f32 1.0, %v2239_v36 }
 0x363   : > { %v939_v43 = vadd.f32 1.0, %v2241_v37  ;;  %v1056_v63 = vpop.permute.xlu0 %1055 }
 0x364   : > { %2078 = vmatpush3.bf16.msra.mxu1 %v969_v33  ;;  %v2243_v45 = vpop.eup %2242  ;;  %v954_v46 = vmul.f32 %v938_v38, %v826_v40 }
 0x365   : > { %v955_v48 = vmul.f32 %v939_v43, %v827_v41  ;;  %v2245_v49 = vpop.eup %2244  ;;  %v940_v51 = vadd.f32 1.0, %v2243_v45 }
 0x366   : > { %v941_v0 = vadd.f32 1.0, %v2245_v49 }
 0x367   : > { %v970_v52 = vpack.c.bf16 %v955_v48, %v954_v46  ;;  %v956_v44 = vmul.f32 %v940_v51, %v828_v56 }
 0x368   : > { %v2247_v50 = vpop.eup %2246  ;;  %v957_v2 = vmul.f32 %v941_v0, %v829_v61 }
 0x369   : > { %2079 = vmatprep.subr.bf16.mxu1 %v970_v52  ;;  %v2249_v47 = vpop.eup %2248  ;;  %v942_v1 = vadd.f32 1.0, %v2247_v50 }
 0x36a   : > { %2080 = vmatpush3.bf16.msra.mxu1 %v970_v52  ;;  %v2251_v3 = vpop.eup %2250  ;;  %v971_v60 = vpack.c.bf16 %v957_v2, %v956_v44  ;;  %v943_v6 = vadd.f32 1.0, %v2249_v47 }
 0x36b   : > { %v2253_v8 = vpop.eup %2252  ;;  %v944_v9 = vadd.f32 1.0, %v2251_v3  ;;  %v958_v54 = vmul.f32 %v942_v1, %v830_v4 }
 0x36c   : > { %2081 = vmatprep.subr.bf16.mxu1 %v971_v60  ;;  %v959_v53 = vmul.f32 %v943_v6, %v831_v5  ;;  %v945_v26 = vadd.f32 1.0, %v2253_v8 }
 0x36d   : > { %v960_v13 = vmul.f32 %v944_v9, %v832_v42  ;;  %v2207_v42 = vld [vmem:[%s3015_s2 + $0x58] sm:$0xff]   ;;  %v2208_v9 = vld [vmem:[%s3015_s2 + $0x60] sm:$0xff]  }
 0x36e   : > { %2082 = vmatpush3.bf16.msra.mxu1 %v971_v60  ;;  %v972_v11 = vpack.c.bf16 %v959_v53, %v958_v54  ;;  %v961_v7 = vmul.f32 %v945_v26, %v833_v10  ;;  %v1183_v53 = vpop.permute.xlu0 %1182 }
 0x370   : > { %2083 = vmatprep.subr.bf16.mxu1 %v972_v11  ;;  %v973_v12 = vpack.c.bf16 %v961_v7, %v960_v13  ;;  %v1188_v13 = vpop.permute.xlu1 %1187 }
 0x372   : > { %2084 = vmatpush3.bf16.msra.mxu1 %v972_v11 }
 0x373   : > { %2085 = vmatprep.subr.bf16.mxu1 %v973_v12 }
 0x376   : > { %2086 = vmatpush3.bf16.msra.mxu1 %v973_v12 }
 0x379   : > { %2088 = vmatmul.mubr.bf16.vlgmr.msra.gmra.mrb[4].mxu1 %v2205_v31 }
 0x37a   : > { %2103 = vmatprep.mubr.msk.bf16.mxu1 %vm421_vm1, %v2208_v9 }
 0x44c   : > { %v2089_v35 = vpop.f32.mrb[4].mxu1 }
 0x44d   : > { %v1020_v14 = vpop.f32.mrb[5].mxu1  ;;  %v1037_v21 = vadd.f32 %v2089_v35, %v2633_v59 }
 0x44e   : > { %v1035_v15 = vadd.f32 %v1020_v14, %v2629_v55  ;;  %v2090_v17 = vpop.f32.mrb[6].mxu1  ;;  %v1193_v14 = vpop.permute.xlu0 %1192 }
 0x44f   : > { %v1023_v19 = vpop.f32.mrb[7].mxu1  ;;  %v1038_v27 = vadd.f32 %v2090_v17, %v2637_v62  ;;  %v1065_v58 = vadd.f32 %v1056_v63, %v1037_v21 }
 0x450   : > { %v1036_v23 = vadd.f32 %v1023_v19, %v2631_v57  ;;  %v1063_v24 = vadd.f32 %v1046_v39, %v1035_v15 }
 0x451   : > { %v1066_v32 = vadd.f32 %v1061_v30, %v1038_v27 }
 0x452   : > { %v1064_v28 = vadd.f32 %v1051_v18, %v1036_v23  ;;  %v1198_v18 = vpop.permute.xlu1 %1197 }
 0x454   : > { %v1067_v29 = vadd.f32 %v1064_v28, %v1063_v24 }
 0x456   : > { %v1068_v20 = vadd.f32 %v1067_v29, %v1065_v58 }
 0x458   : > { %v1069_v33 = vadd.f32 %v1068_v20, %v1066_v32 }
 0x45a   : > { %v1070_v22 = vrot.slane %v1069_v33, 4 }
 0x45c   : > { %v1071_v55 = vadd.f32 %v1070_v22, %v1069_v33 }
 0x45e   : > { %v1072_v16 = vrot.slane %v1071_v55, 2 }
 0x460   : > { %v1073_v34 = vadd.f32 %v1072_v16, %v1071_v55 }
 0x462   : > { %v1074_v36 = vrot.slane %v1073_v34, 1 }
 0x464   : > { %v1075_v37 = vadd.f32 %v1074_v36, %v1073_v34 }
 0x466   : > { %v1076_v59 = vmul.f32 0.03125, %v1075_v37 }
 0x468   : > { %v1078_v38 = vsub.f32 %v1064_v28, %v1076_v59  ;;  %v1077_v57 = vsub.f32 %v1063_v24, %v1076_v59  ;;  %v1079_v40 = vsub.f32 %v1065_v58, %v1076_v59  ;;  %v1080_v62 = vsub.f32 %v1066_v32, %v1076_v59 }
 0x46a   : > { %v1082_v41 = vmul.f32 %v1078_v38, %v1078_v38  ;;  %v1081_v43 = vmul.f32 %v1077_v57, %v1077_v57  ;;  %v1083_v45 = vmul.f32 %v1079_v40, %v1079_v40  ;;  %v1084_v48 = vmul.f32 %v1080_v62, %v1080_v62 }
 0x46c   : > { %v1085_v46 = vadd.f32 %v1082_v41, %v1081_v43 }
 0x46e   : > { %v1086_v49 = vadd.f32 %v1085_v46, %v1083_v45 }
 0x470   : > { %v1087_v51 = vadd.f32 %v1086_v49, %v1084_v48 }
 0x472   : > { %v1088_v52 = vrot.slane %v1087_v51, 4 }
 0x474   : > { %v1089_v56 = vadd.f32 %v1088_v52, %v1087_v51 }
 0x476   : > { %v1090_v61 = vrot.slane %v1089_v56, 2 }
 0x478   : > { %v1091_v0 = vadd.f32 %v1090_v61, %v1089_v56 }
 0x47a   : > { %v1092_v50 = vrot.slane %v1091_v0, 1 }
 0x47c   : > { %v1093_v44 = vadd.f32 %v1092_v50, %v1091_v0 }
 0x47e   : > { %v1094_v2 = vmul.f32 0.03125, %v1093_v44  ;;  %v2209_v44 = vld [vmem:[%s3015_s2 + $0x68] sm:$0xff]  }
 0x480   : > { %v1095_v47 = vadd.f32 1e-05, %v1094_v2  ;;  %v2210_v2 = vld [vmem:[%s3015_s2 + $0x70] sm:$0xff]  }
 0x482   : > { %2254 = vrsqrt.f32 %v1095_v47  ;;  %v2211_v47 = vld [vmem:[%s3015_s2 + $0x78] sm:$0xff]  }
 0x48c   : > { %v2255_v1 = vpop.eup %2254 }
 0x48d   : > { %v1097_v3 = vmul.f32 %v2255_v1, %v1077_v57  ;;  %v1098_v60 = vmul.f32 %v2255_v1, %v1078_v38  ;;  %v1099_v4 = vmul.f32 %v2255_v1, %v1079_v40  ;;  %v1100_v5 = vmul.f32 %v2255_v1, %v1080_v62  ;;  %v2212_v1 = vld [vmem:[%s3015_s2 + $0x80] sm:$0xff]  }
 0x48f   : > { %v1101_v6 = vpack.c.bf16 %v1098_v60, %v1097_v3  ;;  %v1102_v8 = vpack.c.bf16 %v1100_v5, %v1099_v4  ;;  %v2213_v3 = vld [vmem:[%s3015_s2 + $0x88] sm:$0xff]   ;;  %v2214_v60 = vld [vmem:[%s3015_s2 + $0x90] sm:$0xff]   ;;  %v2215_v4 = vld [vmem:[%s3015_s2 + $0x98] sm:$0xff]  }
 0x490   : > { %v2216_v5 = vld [vmem:[%s3016_s3 + $0x10] sm:$0xff]  }
 0x491   : > { %2091 = vmatprep.subr.bf16.mxu0 %v1101_v6 }
 0x492   : > { %2092 = vmatpush3.bf16.msra.mxu0 %v1101_v6  ;;  %v1275_v6 = vpop.permute.xlu0 %1274 }
 0x493   : > { %2093 = vmatprep.subr.bf16.mxu0 %v1102_v8 }
 0x496   : > { %2094 = vmatpush3.bf16.msra.mxu0 %v1102_v8  ;;  %v1280_v8 = vpop.permute.xlu1 %1279 }
 0x499   : > { %2096 = vmatmul.mubr.msk.bf16.vlgmr.msra.gmra.mrb[20].mxu0 %vm421_vm1, %v2207_v42  ;;  %v1285_v42 = vpop.permute.xlu0 %1284 }
 0x49a   : > { %2135 = vmatprep.mubr.bf16.mxu0 %v2216_v5  ;;  %v1290_v9 = vpop.permute.xlu1 %1289 }
 0x56c   : > { %v2097_v54 = vpop.f32.mrb[20].mxu0 }
 0x56d   : > { %v1157_v10 = vpop.f32.mrb[21].mxu0  ;;  %v1174_v12 = vadd.f32 %v2097_v54, %v1065_v58  ;;  %v1295_v54 = vpop.permute.xlu0 %1294 }
 0x56e   : > { %v1172_v26 = vadd.f32 %v1157_v10, %v1063_v24  ;;  %v2098_v11 = vpop.f32.mrb[22].mxu0 }
 0x56f   : > { %v1160_v7 = vpop.f32.mrb[23].mxu0  ;;  %v1175_v35 = vadd.f32 %v2098_v11, %v1066_v32  ;;  %v2804_v15 = vadd.f32 %v1193_v14, %v1174_v12 }
 0x570   : > { %v1173_v31 = vadd.f32 %v1160_v7, %v1064_v28  ;;  %v2800_v25 = vadd.f32 %v1183_v53, %v1172_v26  ;;  %v1300_v53 = vpop.permute.xlu1 %1299 }
 0x571   : > { %v2808_v19 = vadd.f32 %v1198_v18, %v1175_v35  ;;  %v1305_v10 = vpop.permute.xlu0 %1304 }
 0x572   : > { %v2802_v39 = vadd.f32 %v1188_v13, %v1173_v31 }
 0x574   : > { %v1204_v17 = vadd.f32 %v2802_v39, %v2800_v25  ;;  %v1310_v7 = vpop.permute.xlu1 %1309 }
 0x576   : > { %v1205_v21 = vadd.f32 %v1204_v17, %v2804_v15 }
 0x578   : > { %v1206_v23 = vadd.f32 %v1205_v21, %v2808_v19 }
 0x57a   : > { %v1207_v24 = vrot.slane %v1206_v23, 4 }
 0x57c   : > { %v1208_v27 = vadd.f32 %v1207_v24, %v1206_v23 }
 0x57e   : > { %v1209_v28 = vrot.slane %v1208_v27, 2 }
 0x580   : > { %v1210_v63 = vadd.f32 %v1209_v28, %v1208_v27  ;;  %v1315_v27 = vpop.permute.xlu0 %1314 }
 0x582   : > { %v1211_v58 = vrot.slane %v1210_v63, 1 }
 0x584   : > { %v1212_v29 = vadd.f32 %v1211_v58, %v1210_v63 }
 0x586   : > { %v1213_v30 = vmul.f32 0.03125, %v1212_v29 }
 0x588   : > { %v1215_v32 = vsub.f32 %v2802_v39, %v1213_v30  ;;  %v1214_v20 = vsub.f32 %v2800_v25, %v1213_v30  ;;  %v1216_v33 = vsub.f32 %v2804_v15, %v1213_v30  ;;  %v1217_v55 = vsub.f32 %v2808_v19, %v1213_v30  ;;  %v1320_v30 = vpop.permute.xlu1 %1319 }
 0x58a   : > { %v1219_v22 = vmul.f32 %v1215_v32, %v1215_v32  ;;  %v1218_v16 = vmul.f32 %v1214_v20, %v1214_v20  ;;  %v1220_v34 = vmul.f32 %v1216_v33, %v1216_v33  ;;  %v1221_v37 = vmul.f32 %v1217_v55, %v1217_v55 }
 0x58c   : > { %v1222_v36 = vadd.f32 %v1219_v22, %v1218_v16 }
 0x58e   : > { %v1223_v59 = vadd.f32 %v1222_v36, %v1220_v34 }
 0x590   : > { %v1224_v38 = vadd.f32 %v1223_v59, %v1221_v37 }
 0x592   : > { %v1225_v57 = vrot.slane %v1224_v38, 4 }
 0x594   : > { %v1226_v40 = vadd.f32 %v1225_v57, %v1224_v38 }
 0x596   : > { %v1227_v41 = vrot.slane %v1226_v40, 2 }
 0x598   : > { %v1228_v62 = vadd.f32 %v1227_v41, %v1226_v40 }
 0x59a   : > { %v1229_v43 = vrot.slane %v1228_v62, 1 }
 0x59c   : > { %v1230_v45 = vadd.f32 %v1229_v43, %v1228_v62 }
 0x59e   : > { %v1231_v46 = vmul.f32 0.03125, %v1230_v45  ;;  %v1325_v45 = vpop.permute.xlu0 %1324 }
 0x5a0   : > { %v1232_v48 = vadd.f32 1e-05, %v1231_v46 }
 0x5a2   : > { %2256 = vrsqrt.f32 %v1232_v48 }
 0x5ac   : > { %v2257_v49 = vpop.eup %2256 }
 0x5ad   : > { %v1234_v51 = vmul.f32 %v2257_v49, %v1214_v20  ;;  %v1235_v52 = vmul.f32 %v2257_v49, %v1215_v32  ;;  %v1236_v56 = vmul.f32 %v2257_v49, %v1216_v33  ;;  %v1237_v61 = vmul.f32 %v2257_v49, %v1217_v55 }
 0x5af   : > { %v1238_v0 = vpack.c.bf16 %v1235_v52, %v1234_v51  ;;  %v1239_v50 = vpack.c.bf16 %v1237_v61, %v1236_v56 }
 0x5b1   : > { %2099 = vmatprep.subr.bf16.mxu1 %v1238_v0 }
 0x5b2   : > { %2100 = vmatpush3.bf16.msra.mxu1 %v1238_v0  ;;  %v1330_v0 = vpop.permute.xlu1 %1329 }
 0x5b3   : > { %2101 = vmatprep.subr.bf16.mxu1 %v1239_v50 }
 0x5b6   : > { %2102 = vmatpush3.bf16.msra.mxu1 %v1239_v50 }
 0x5b9   : > { %2104 = vmatmul.mubr.msk.bf16.vlgmr.msra.gmra.mrb[8].mxu1 %vm421_vm1, %v2209_v44 }
 0x5ba   : > { %2107 = vmatprep.mubr.msk.bf16.mxu1 %vm421_vm1, %v2210_v2 }
 0x5c1   : > { %2108 = vmatmul.mubr.msk.bf16.gmra.mrb[12].mxu1 %vm421_vm1, %v2211_v47 }
 0x5c2   : > { %2111 = vmatprep.mubr.msk.bf16.mxu1 %vm421_vm1, %v2212_v1 }
 0x5c9   : > { %2112 = vmatmul.mubr.msk.bf16.gmra.mrb[16].mxu1 %vm421_vm1, %v2213_v3 }
 0x5ca   : > { %2115 = vmatprep.mubr.msk.bf16.mxu1 %vm421_vm1, %v2214_v60 }
 0x5d1   : > { %2116 = vmatmul.mubr.msk.bf16.gmra.mrb[20].mxu1 %vm421_vm1, %v2215_v4 }
 0x68c   : > { %v2105_v26 = vpop.f32.mrb[8].mxu1 }
 0x68d   : > { %v1459_v11 = vadd.f32 %v2105_v26, %v1285_v42  ;;  %v1450_v13 = vpop.f32.mrb[9].mxu1 }
 0x68e   : > { %v2847_v12 = vadd.f32 %v1450_v13, %v1275_v6  ;;  %v2106_v31 = vpop.f32.mrb[10].mxu1 }
 0x68f   : > { %v1531_v35 = vmul.f32 0.044715, %v1459_v11  ;;  %v2849_v14 = vadd.f32 %v2106_v31, %v1290_v9  ;;  %v1453_v17 = vpop.f32.mrb[11].mxu1  ;;  %v1515_v42 = vmul.f32 0.5, %v1459_v11  ;;  %v1335_v9 = vpop.permute.xlu0 %1334 }
 0x690   : > { %v1529_v18 = vmul.f32 0.044715, %v2847_v12  ;;  %v2852_v21 = vadd.f32 %v1453_v17, %v1280_v8  ;;  %v1513_v17 = vmul.f32 0.5, %v2847_v12 }
 0x691   : > { %v1547_v23 = vmul.f32 %v1531_v35, %v1459_v11  ;;  %v1532_v24 = vmul.f32 0.044715, %v2849_v14 }
 0x692   : > { %v1545_v28 = vmul.f32 %v1529_v18, %v2847_v12  ;;  %v1530_v63 = vmul.f32 0.044715, %v2852_v21 }
 0x693   : > { %v1563_v58 = vmul.f32 %v1547_v23, %v1459_v11  ;;  %v1548_v29 = vmul.f32 %v1532_v24, %v2849_v14 }
 0x694   : > { %v1561_v32 = vmul.f32 %v1545_v28, %v2847_v12  ;;  %v1546_v20 = vmul.f32 %v1530_v63, %v2852_v21  ;;  %v2109_v33 = vpop.f32.mrb[12].mxu1 }
 0x695   : > { %v1564_v22 = vmul.f32 %v1548_v29, %v2849_v14  ;;  %v2861_v55 = vadd.f32 %v2109_v33, %v1305_v10  ;;  %v1466_v16 = vpop.f32.mrb[13].mxu1  ;;  %v1579_v34 = vadd.f32 %v1563_v58, %v1459_v11  ;;  %v1340_v11 = vpop.permute.xlu1 %1339 }
 0x696   : > { %v1562_v36 = vmul.f32 %v1546_v20, %v2852_v21  ;;  %v2864_v37 = vadd.f32 %v1466_v16, %v1295_v54  ;;  %v2110_v59 = vpop.f32.mrb[14].mxu1  ;;  %v1577_v38 = vadd.f32 %v1561_v32, %v2847_v12 }
 0x697   : > { %v1535_v57 = vmul.f32 0.044715, %v2861_v55  ;;  %v2868_v40 = vadd.f32 %v2110_v59, %v1310_v7  ;;  %v1469_v41 = vpop.f32.mrb[15].mxu1  ;;  %v1580_v62 = vadd.f32 %v1564_v22, %v2849_v14  ;;  %v1595_v43 = vmul.f32 0.7978846, %v1579_v34  ;;  %v1345_v59 = vpop.permute.xlu0 %1344 }
 0x698   : > { %v1533_v46 = vmul.f32 0.044715, %v2864_v37  ;;  %v2872_v48 = vadd.f32 %v1469_v41, %v1300_v53  ;;  %v1578_v49 = vadd.f32 %v1562_v36, %v2852_v21  ;;  %v1593_v51 = vmul.f32 0.7978846, %v1577_v38 }
 0x699   : > { %v1551_v52 = vmul.f32 %v1535_v57, %v2861_v55  ;;  %v1536_v56 = vmul.f32 0.044715, %v2868_v40  ;;  %v1596_v61 = vmul.f32 0.7978846, %v1580_v62  ;;  %2258 = vtanh.f32 %v1595_v43 }
 0x69a   : > { %v1549_v50 = vmul.f32 %v1533_v46, %v2864_v37  ;;  %v1534_v44 = vmul.f32 0.044715, %v2872_v48  ;;  %v1594_v2 = vmul.f32 0.7978846, %v1578_v49  ;;  %2260 = vtanh.f32 %v1593_v51 }
 0x69b   : > { %v1567_v47 = vmul.f32 %v1551_v52, %v2861_v55  ;;  %v1552_v1 = vmul.f32 %v1536_v56, %v2868_v40  ;;  %2262 = vtanh.f32 %v1596_v61  ;;  %v1516_v34 = vmul.f32 0.5, %v2849_v14  ;;  %v1350_v14 = vpop.permute.xlu1 %1349 }
 0x69c   : > { %v1565_v3 = vmul.f32 %v1549_v50, %v2864_v37  ;;  %v1550_v60 = vmul.f32 %v1534_v44, %v2872_v48  ;;  %v2113_v4 = vpop.f32.mrb[16].mxu1  ;;  %2264 = vtanh.f32 %v1594_v2  ;;  %v1517_v62 = vmul.f32 0.5, %v2864_v37 }
 0x69d   : > { %v1568_v5 = vmul.f32 %v1552_v1, %v2868_v40  ;;  %v2884_v6 = vadd.f32 %v2113_v4, %v1325_v45  ;;  %v1482_v8 = vpop.f32.mrb[17].mxu1  ;;  %v1583_v13 = vadd.f32 %v1567_v47, %v2861_v55 }
 0x69e   : > { %v1566_v54 = vmul.f32 %v1550_v60, %v2872_v48  ;;  %v2887_v53 = vadd.f32 %v1482_v8, %v1315_v27  ;;  %v2114_v10 = vpop.f32.mrb[18].mxu1  ;;  %v1581_v26 = vadd.f32 %v1565_v3, %v2864_v37 }
 0x69f   : > { %v1539_v7 = vmul.f32 0.044715, %v2884_v6  ;;  %v2892_v31 = vadd.f32 %v2114_v10, %v1330_v0  ;;  %v1485_v35 = vpop.f32.mrb[19].mxu1  ;;  %v1584_v18 = vadd.f32 %v1568_v5, %v2868_v40  ;;  %v1599_v29 = vmul.f32 0.7978846, %v1583_v13 }
 0x6a0   : > { %v1537_v23 = vmul.f32 0.044715, %v2887_v53  ;;  %v2897_v24 = vadd.f32 %v1485_v35, %v1320_v30  ;;  %v1582_v27 = vadd.f32 %v1566_v54, %v2872_v48  ;;  %v1597_v28 = vmul.f32 0.7978846, %v1581_v26 }
 0x6a1   : > { %v1555_v63 = vmul.f32 %v1539_v7, %v2884_v6  ;;  %v1540_v58 = vmul.f32 0.044715, %v2892_v31  ;;  %v1600_v32 = vmul.f32 0.7978846, %v1584_v18  ;;  %v1514_v30 = vmul.f32 0.5, %v2852_v21 }
 0x6a2   : > { %v1553_v20 = vmul.f32 %v1537_v23, %v2887_v53  ;;  %v1538_v12 = vmul.f32 0.044715, %v2897_v24  ;;  %v1598_v33 = vmul.f32 0.7978846, %v1582_v27  ;;  %2266 = vtanh.f32 %v1597_v28 }
 0x6a3   : > { %v2259_v22 = vpop.eup %2258  ;;  %v1556_v16 = vmul.f32 %v1540_v58, %v2892_v31  ;;  %2268 = vtanh.f32 %v1599_v29  ;;  %v1571_v52 = vmul.f32 %v1555_v63, %v2884_v6  ;;  %v1519_v63 = vmul.f32 0.5, %v2861_v55 }
 0x6a4   : > { %v2261_v36 = vpop.eup %2260  ;;  %v1554_v38 = vmul.f32 %v1538_v12, %v2897_v24  ;;  %v2117_v57 = vpop.f32.mrb[20].mxu1  ;;  %v1627_v41 = vadd.f32 1.0, %v2259_v22  ;;  %2270 = vtanh.f32 %v1598_v33  ;;  %v1569_v45 = vmul.f32 %v1553_v20, %v2887_v53 }
 0x6a5   : > { %v2263_v43 = vpop.eup %2262  ;;  %v2910_v46 = vadd.f32 %v2117_v57, %v1345_v59  ;;  %v1498_v49 = vpop.f32.mrb[21].mxu1  ;;  %v1625_v51 = vadd.f32 1.0, %v2261_v36  ;;  %2272 = vtanh.f32 %v1600_v32  ;;  %v1572_v37 = vmul.f32 %v1556_v16, %v2892_v31 }
 0x6a6   : > { %v2265_v21 = vpop.eup %2264  ;;  %v1570_v56 = vmul.f32 %v1554_v38, %v2897_v24  ;;  %v2914_v61 = vadd.f32 %v1498_v49, %v1335_v9  ;;  %v2118_v0 = vpop.f32.mrb[22].mxu1  ;;  %v1628_v50 = vadd.f32 1.0, %v2263_v43  ;;  %v1643_v4 = vmul.f32 %v1627_v41, %v1515_v42 }
 0x6a7   : > { %v1543_v44 = vmul.f32 0.044715, %v2910_v46  ;;  %v2918_v2 = vadd.f32 %v2118_v0, %v1350_v14  ;;  %v1501_v47 = vpop.f32.mrb[23].mxu1  ;;  %v1626_v1 = vadd.f32 1.0, %v2265_v21  ;;  %v1641_v9 = vmul.f32 %v1625_v51, %v1513_v17 }
 0x6a8   : > { %v1541_v3 = vmul.f32 0.044715, %v2914_v61  ;;  %v2921_v60 = vadd.f32 %v1501_v47, %v1340_v11  ;;  %v1644_v5 = vmul.f32 %v1628_v50, %v1516_v34  ;;  %v1585_v10 = vadd.f32 %v1569_v45, %v2887_v53 }
 0x6a9   : > { %v1544_v8 = vmul.f32 0.044715, %v2918_v2  ;;  %v1642_v54 = vmul.f32 %v1626_v1, %v1514_v30  ;;  %v1586_v35 = vadd.f32 %v1570_v56, %v2897_v24  ;;  %v1559_v18 = vmul.f32 %v1543_v44, %v2910_v46 }
 0x6aa   : > { %v1557_v26 = vmul.f32 %v1541_v3, %v2914_v61  ;;  %v1542_v13 = vmul.f32 0.044715, %v2921_v60  ;;  %v1662_v7 = vpack.c.bf16 %v1644_v5, %v1643_v4  ;;  %v1518_v11 = vmul.f32 0.5, %v2872_v48 }
 0x6ab   : > { %v1661_v23 = vpack.c.bf16 %v1642_v54, %v1641_v9  ;;  %v1601_v42 = vmul.f32 0.7978846, %v1585_v10  ;;  %v1560_v28 = vmul.f32 %v1544_v8, %v2918_v2  ;;  %v1602_v58 = vmul.f32 0.7978846, %v1586_v35 }
 0x6ac   : > { %v2267_v27 = vpop.eup %2266  ;;  %v1558_v17 = vmul.f32 %v1542_v13, %v2921_v60  ;;  %v1573_v32 = vmul.f32 %v1557_v26, %v2914_v61  ;;  %v1587_v12 = vadd.f32 %v1571_v52, %v2884_v6  ;;  %v1588_v16 = vadd.f32 %v1572_v37, %v2892_v31 }
 0x6ad   : > { %v2269_v29 = vpop.eup %2268  ;;  %2119 = vmatprep.subr.bf16.mxu0 %v1661_v23  ;;  %v1629_v20 = vadd.f32 1.0, %v2267_v27  ;;  %2274 = vtanh.f32 %v1601_v42  ;;  %v1575_v55 = vmul.f32 %v1559_v18, %v2910_v46  ;;  %v1520_v36 = vmul.f32 0.5, %v2868_v40 }
 0x6ae   : > { %v2271_v33 = vpop.eup %2270  ;;  %v1574_v48 = vmul.f32 %v1558_v17, %v2921_v60  ;;  %2120 = vmatpush3.bf16.msra.mxu0 %v1661_v23  ;;  %v1631_v22 = vadd.f32 1.0, %v2269_v29  ;;  %2276 = vtanh.f32 %v1602_v58  ;;  %v1603_v59 = vmul.f32 0.7978846, %v1587_v12 }
 0x6af   : > { %v2273_v30 = vpop.eup %2272  ;;  %2121 = vmatprep.subr.bf16.mxu0 %v1662_v7  ;;  %v1630_v34 = vadd.f32 1.0, %v2271_v33  ;;  %v1576_v38 = vmul.f32 %v1560_v28, %v2918_v2  ;;  %v1645_v57 = vmul.f32 %v1629_v20, %v1517_v62  ;;  %v1604_v43 = vmul.f32 0.7978846, %v1588_v16 }
 0x6b0   : > { %v1632_v41 = vadd.f32 1.0, %v2273_v30  ;;  %2278 = vtanh.f32 %v1603_v59  ;;  %v1589_v49 = vadd.f32 %v1573_v32, %v2914_v61  ;;  %v1590_v51 = vadd.f32 %v1574_v48, %v2921_v60 }
 0x6b1   : > { %v1646_v45 = vmul.f32 %v1630_v34, %v1518_v11  ;;  %v1647_v21 = vmul.f32 %v1631_v22, %v1519_v63  ;;  %2280 = vtanh.f32 %v1604_v43  ;;  %v1591_v40 = vadd.f32 %v1575_v55, %v2910_v46 }
 0x6b2   : > { %2122 = vmatpush3.bf16.msra.mxu0 %v1662_v7  ;;  %v1648_v14 = vmul.f32 %v1632_v41, %v1520_v36  ;;  %v1605_v56 = vmul.f32 0.7978846, %v1589_v49  ;;  %v1606_v0 = vmul.f32 0.7978846, %v1590_v51  ;;  %v1592_v62 = vadd.f32 %v1576_v38, %v2918_v2  ;;  %v1746_v38 = vpop.permute.xlu1 %1745 }
 0x6b3   : > { %v1663_v52 = vpack.c.bf16 %v1646_v45, %v1645_v57  ;;  %v1607_v37 = vmul.f32 0.7978846, %v1591_v40  ;;  %v1521_v4 = vmul.f32 0.5, %v2887_v53  ;;  %v1522_v5 = vmul.f32 0.5, %v2897_v24 }
 0x6b4   : > { %v1664_v50 = vpack.c.bf16 %v1648_v14, %v1647_v21  ;;  %2282 = vtanh.f32 %v1605_v56  ;;  %v1608_v44 = vmul.f32 0.7978846, %v1592_v62  ;;  %v1523_v35 = vmul.f32 0.5, %v2884_v6 }
 0x6b5   : > { %2123 = vmatprep.subr.bf16.mxu0 %v1663_v52  ;;  %2284 = vtanh.f32 %v1606_v0  ;;  %v1524_v18 = vmul.f32 0.5, %v2892_v31  ;;  %v1525_v63 = vmul.f32 0.5, %v2914_v61  ;;  %v1526_v58 = vmul.f32 0.5, %v2921_v60  ;;  %v2217_v61 = vld [vmem:[%s3016_s3 + $0x18] sm:$0xff]   ;;  %v1741_v60 = vpop.permute.xlu0 %1740 }
 0x6b6   : > { %2124 = vmatpush3.bf16.msra.mxu0 %v1663_v52  ;;  %2286 = vtanh.f32 %v1607_v37  ;;  %v1527_v6 = vmul.f32 0.5, %v2910_v46  ;;  %v1528_v33 = vmul.f32 0.5, %v2918_v2  ;;  %v2357_v46 = vmov 0.0   ;;  %v1756_v56 = vpop.permute.xlu1 %1755 }
 0x6b7   : > { %v2275_v47 = vpop.eup %2274  ;;  %2125 = vmatprep.subr.bf16.mxu0 %v1664_v50  ;;  %2288 = vtanh.f32 %v1608_v44  ;;  %2139 = vmatprep.subr.bf16.mxu1 %v2357_v46 }
 0x6b8   : > { %v2277_v1 = vpop.eup %2276  ;;  %v1633_v3 = vadd.f32 1.0, %v2275_v47  ;;  %2143 = vmatprep.mubr.msk.bf16.mxu1 %vm2358_vm2, %v2357_v46 }
 0x6b9   : > { %v1634_v8 = vadd.f32 1.0, %v2277_v1  ;;  %v1751_v21 = vpop.permute.xlu0 %1750 }
 0x6ba   : > { %2126 = vmatpush3.bf16.msra.mxu0 %v1664_v50  ;;  %v2279_v9 = vpop.eup %2278  ;;  %v1649_v54 = vmul.f32 %v1633_v3, %v1521_v4 }
 0x6bb   : > { %v1650_v10 = vmul.f32 %v1634_v8, %v1522_v5  ;;  %v2281_v26 = vpop.eup %2280  ;;  %v1635_v13 = vadd.f32 1.0, %v2279_v9 }
 0x6bc   : > { %v1636_v23 = vadd.f32 1.0, %v2281_v26 }
 0x6bd   : > { %v1665_v7 = vpack.c.bf16 %v1650_v10, %v1649_v54  ;;  %v1651_v42 = vmul.f32 %v1635_v13, %v1523_v35 }
 0x6be   : > { %v2283_v11 = vpop.eup %2282  ;;  %v1652_v27 = vmul.f32 %v1636_v23, %v1524_v18 }
 0x6bf   : > { %2127 = vmatprep.subr.bf16.mxu0 %v1665_v7  ;;  %v2285_v53 = vpop.eup %2284  ;;  %v1637_v24 = vadd.f32 1.0, %v2283_v11 }
 0x6c0   : > { %2128 = vmatpush3.bf16.msra.mxu0 %v1665_v7  ;;  %v2287_v28 = vpop.eup %2286  ;;  %v1666_v17 = vpack.c.bf16 %v1652_v27, %v1651_v42  ;;  %v1638_v29 = vadd.f32 1.0, %v2285_v53 }
 0x6c1   : > { %v2289_v32 = vpop.eup %2288  ;;  %v1639_v20 = vadd.f32 1.0, %v2287_v28  ;;  %v1653_v31 = vmul.f32 %v1637_v24, %v1525_v63 }
 0x6c2   : > { %2129 = vmatprep.subr.bf16.mxu0 %v1666_v17  ;;  %v1654_v12 = vmul.f32 %v1638_v29, %v1526_v58  ;;  %v1640_v48 = vadd.f32 1.0, %v2289_v32 }
 0x6c3   : > { %v1655_v16 = vmul.f32 %v1639_v20, %v1527_v6  ;;  %v1798_v6 = vld [vmem:[%s3015_s2 + $0xa0] sm:$0x1]  ;;  %v1803_v20 = vpop.permute.xlu0 %1802 }
 0x6c4   : > { %2130 = vmatpush3.bf16.msra.mxu0 %v1666_v17  ;;  %v1667_v22 = vpack.c.bf16 %v1654_v12, %v1653_v31  ;;  %v1656_v30 = vmul.f32 %v1640_v48, %v1528_v33 }
 0x6c6   : > { %2131 = vmatprep.subr.bf16.mxu0 %v1667_v22  ;;  %v1668_v55 = vpack.c.bf16 %v1656_v30, %v1655_v16 }
 0x6c8   : > { %2132 = vmatpush3.bf16.msra.mxu0 %v1667_v22 }
 0x6c9   : > { %2133 = vmatprep.subr.bf16.mxu0 %v1668_v55 }
 0x6cc   : > { %2134 = vmatpush3.bf16.msra.mxu0 %v1668_v55 }
 0x6cf   : > { %2136 = vmatmul.mubr.bf16.vlgmr.msra.gmra.mrb[24].mxu0 %v2217_v61 }
 0x7a2   : > { %v2137_v2 = vpop.f32.mrb[24].mxu0 }
 0x7a3   : > { %v1715_v34 = vpop.f32.mrb[25].mxu0  ;;  %v1732_v41 = vadd.f32 %v2137_v2, %v2804_v15 }
 0x7a4   : > { %v1730_v36 = vadd.f32 %v1715_v34, %v2800_v25  ;;  %v2138_v59 = vpop.f32.mrb[26].mxu0 }
 0x7a5   : > { %v1718_v57 = vpop.f32.mrb[27].mxu0  ;;  %v1733_v49 = vadd.f32 %v2138_v59, %v2808_v19  ;;  %v1760_v14 = vadd.f32 %v1751_v21, %v1732_v41 }
 0x7a6   : > { %v1731_v43 = vadd.f32 %v1718_v57, %v2802_v39  ;;  %v1758_v45 = vadd.f32 %v1741_v60, %v1730_v36 }
 0x7a7   : > { %v1761_v0 = vadd.f32 %v1756_v56, %v1733_v49 }
 0x7a8   : > { %v1759_v51 = vadd.f32 %v1746_v38, %v1731_v43 }
 0x7aa   : > { %v1762_v52 = vadd.f32 %v1759_v51, %v1758_v45 }
 0x7ac   : > { %v1763_v40 = vadd.f32 %v1762_v52, %v1760_v14 }
 0x7ae   : > { %v1764_v50 = vadd.f32 %v1763_v40, %v1761_v0 }
 0x7b0   : > { %v1765_v62 = vrot.slane %v1764_v50, 4 }
 0x7b2   : > { %v1766_v25 = vadd.f32 %v1765_v62, %v1764_v50 }
 0x7b4   : > { %v1767_v37 = vrot.slane %v1766_v25, 2 }
 0x7b6   : > { %v1768_v44 = vadd.f32 %v1767_v37, %v1766_v25 }
 0x7b8   : > { %v1769_v47 = vrot.slane %v1768_v44, 1 }
 0x7ba   : > { %v1770_v1 = vadd.f32 %v1769_v47, %v1768_v44 }
 0x7bc   : > { %v1771_v15 = vmul.f32 0.03125, %v1770_v1 }
 0x7be   : > { %v1772_v3 = vsub.f32 %v1758_v45, %v1771_v15  ;;  %v1773_v39 = vsub.f32 %v1759_v51, %v1771_v15  ;;  %v1774_v4 = vsub.f32 %v1760_v14, %v1771_v15  ;;  %v1775_v5 = vsub.f32 %v1761_v0, %v1771_v15 }
 0x7c0   : > { %v1776_v19 = vmul.f32 %v1772_v3, %v1772_v3  ;;  %v1777_v8 = vmul.f32 %v1773_v39, %v1773_v39  ;;  %v1778_v9 = vmul.f32 %v1774_v4, %v1774_v4  ;;  %v1779_v10 = vmul.f32 %v1775_v5, %v1775_v5 }
 0x7c2   : > { %v1780_v54 = vadd.f32 %v1777_v8, %v1776_v19 }
 0x7c4   : > { %v1781_v26 = vadd.f32 %v1780_v54, %v1778_v9 }
 0x7c6   : > { %v1782_v13 = vadd.f32 %v1781_v26, %v1779_v10 }
 0x7c8   : > { %v1783_v7 = vrot.slane %v1782_v13, 4 }
 0x7ca   : > { %v1784_v35 = vadd.f32 %v1783_v7, %v1782_v13 }
 0x7cc   : > { %v1785_v18 = vrot.slane %v1784_v35, 2 }
 0x7ce   : > { %v1786_v23 = vadd.f32 %v1785_v18, %v1784_v35 }
 0x7d0   : > { %v1787_v11 = vrot.slane %v1786_v23, 1 }
 0x7d2   : > { %v1788_v42 = vadd.f32 %v1787_v11, %v1786_v23 }
 0x7d4   : > { %v1789_v27 = vmul.f32 0.03125, %v1788_v42 }
 0x7d6   : > { %v1790_v53 = vadd.f32 1e-05, %v1789_v27 }
 0x7d8   : > { %2290 = vrsqrt.f32 %v1790_v53 }
 0x7e2   : > { %v2291_v24 = vpop.eup %2290 }
 0x7e3   : > { %v1793_v28 = vmul.f32 %v2291_v24, %v1773_v39  ;;  %v1792_v17 = vmul.f32 %v2291_v24, %v1772_v3  ;;  %v1794_v63 = vmul.f32 %v2291_v24, %v1774_v4  ;;  %v1795_v58 = vmul.f32 %v2291_v24, %v1775_v5 }
 0x7e5   : > { %v1796_v29 = vpack.c.bf16 %v1793_v28, %v1792_v17  ;;  %v1797_v32 = vpack.c.bf16 %v1795_v58, %v1794_v63 }
 0x7e7   : > { %2140 = vmatpush3.bf16.msra.mxu1 %v1796_v29 }
 0x7e8   : > { %2141 = vmatprep.subr.bf16.mxu1 %v2357_v46 }
 0x7eb   : > { %2142 = vmatpush3.bf16.msra.mxu1 %v1797_v32 }
 0x7ee   : > { %2144 = vmatmul.mubr.msk.bf16.vlgmr.msra.gmra.mrb[24].mxu1 %vm421_vm1, %v1798_v6 }
 0x8c1   : > { %v1842_v31 = vpop.f32.mrb[24].mxu1 }
 0x8c2   : > { %v1843_v12 = vadd.f32 %v1842_v31, %v1803_v20  ;;  %v2145_v33 = vpop.f32.mrb[25].mxu1 }
 0x8c3   : > { %v1845_v48 = vpop.f32.mrb[26].mxu1 }
 0x8c4   : > { %1848 = vst [vmem:[%s266_s10] sm:$0x1] %v1843_v12  ;;  %v2146_v22 = vpop.f32.mrb[27].mxu1 }
 0x8c5   : > { %2305 = shalt.err (!%p2302_p5)
}
 0x8c6   : > { %s2306_s16 = scalar_lea.hbm %s2969_s14, 16  ;;  %s2310_s6 = scalar_lea.hbm %s3018_s5, 32 }
 0x8c7   : > { %p2307_p7 = scmp.ne.s32.totalorder %s2969_s14, %s2306_s16  ;;  %p2311_p12 = scmp.lt.u32.totalorder %s2969_s14, %s3018_s5 }
 0x8c8   : > { %p2312_p13 = scmp.lt.u32.totalorder %s2310_s6, %s2306_s16  ;;  %p2314_p1 = scmp.lt.u32.totalorder %s2306_s16, %s2969_s14 }
 0x8c9   : > { %p2308_p10 = pnand %p2307_p7, %p2428_p6 }
 0x8ca   : > { %p2313_p0 = por %p2312_p13, %p2311_p12 }
 0x8cb   : > { %p2309_p11 = pneg %p2308_p10 }
 0x8cc   : > { %p2315_p2 = por %p2314_p1, %p2313_p0 }
 0x8ce   : > { %p2316_p3 = pnand %p2315_p2, %p2309_p11 }
 0x8d0   : > { %2319 = shalt.err (!%p2316_p3)
}
 0x8d1   : > { %2147 = dma.vmem_to_hbm [thread:$0]  (%p2428_p6), %s2971_s11, 16, %s2969_s14, %s1850_s22  }
 0x8d2 PF: > { %s1874_s9 = sand.u32 1, %s2342_s18   ;;  %p2150_p4 = pnand %p1925_p9, %p2432_p8 }
 0x8d3   : > { %s1875_s10 = scalar_lea.sflag [#allocation4], %s1874_s9 }
 0x8d4   : > { %2337 = dma.done.wait (!%p2150_p4), %s1875_s10, 16  }
 0x8d5   : > { %2339 = vsyncadd (!%p2150_p4), %s1875_s10, 4294967280  ;;  %p15_p5 = scmp.ge.s32.totalorder %s2413_s24, 4   ;;  %s3021_s18 = smov %s2346_s19 }
 0x8d6   : > { %s3022_s19 = smov %s2350_s20  ;;  %s3023_s20 = smov %s2426_s27 }
 0x8d7   : > { %s3024_s21 = smov %s2413_s24  ;;  %17 = sbr.rel (!%p15_p5) target bundleno = 3 (0x3), region = 121 }
 0x8de   :  { %1879 = vsyncpa [#allocation4], 1 }
 0x8df   :  { %1881 = vsyncpa [#allocation4 + $0x1], 1 }

</bundles_post_ra>
